<compile_context>
chip_gen: v6e
topology: v6e:2x2x1
jax: 0.10.0
libtpu: 0.0.40
codegen_flags: <defaults>
</compile_context>

<pallas_src>
import functools

import jax
import jax.numpy as jnp
import numpy as np
from jax.experimental import pallas as pl
from jax.experimental.pallas import tpu as pltpu

_H_PTP = 256  # hidden width of ptp_fc = MLP(ptp_size, 256, E, 3) (hard-coded in PyTorch)


# -----------------------------------------------------------------------------
# Static layout of the two packed weight slabs
# -----------------------------------------------------------------------------
def _round8(n):
    return ((n + 7) // 8) * 8


def build_layout(E, C, P, F, num_layers):
    """Row layout (all static Python ints) of the two packed f32 weight slabs."""
    CE = C * E
    D = CE + E
    wa_cols = max(D, _H_PTP)      # "wide" slab:   ptp_fc w1/w2 + per-layer w2/LN params
    wb_cols = max(F, E)           # "narrow" slab: ptp_fc w3 + per-layer w1 + last_mlp

    la, lb = {}, {}
    off = [0]

    def add(table, name, rows, cols):
        table[name] = (off[0], rows, cols)
        off[0] += _round8(rows)

    # --- slab A (wide) ---
    add(la, "pw1", P, _H_PTP)
    add(la, "pb1", 1, _H_PTP)
    add(la, "pw2", _H_PTP, _H_PTP)
    add(la, "pb2", 1, _H_PTP)
    for l in range(num_layers):
        add(la, f"lw2_{l}", F, D)
        add(la, f"lb2_{l}", 1, D)
        add(la, f"lng_{l}", 1, D)
        add(la, f"lnb_{l}", 1, D)
    rows_a = off[0]

    # --- slab B (narrow) ---
    off = [0]
    add(lb, "pw3", _H_PTP, E)
    add(lb, "pb3", 1, E)
    for l in range(num_layers):
        add(lb, f"lw1_{l}", D, F)
        add(lb, f"lb1_{l}", 1, F)
    add(lb, "mw1", D, E)
    add(lb, "mb1", 1, E)
    add(lb, "mw2", E, E)
    add(lb, "mb2", 1, E)
    add(lb, "mw3", E, E)
    add(lb, "mb3", 1, E)
    rows_b = off[0]

    return {"la": la, "rows_a": rows_a, "wa_cols": wa_cols,
            "lb": lb, "rows_b": rows_b, "wb_cols": wb_cols,
            "CE": CE, "D": D}


def pack_params(params, layout, num_layers):
    """Pack the individual weight arrays into the two dense slabs (one-time cost)."""
    wa = jnp.zeros((layout["rows_a"], layout["wa_cols"]), jnp.float32)
    wb = jnp.zeros((layout["rows_b"], layout["wb_cols"]), jnp.float32)

    def put(buf, entry, val):
        r0, rows, cols = entry
        return buf.at[r0:r0 + rows, :cols].set(val.astype(jnp.float32))

    la, lb = layout["la"], layout["lb"]
    wa = put(wa, la["pw1"], params["pw1"])
    wa = put(wa, la["pb1"], params["pb1"])
    wa = put(wa, la["pw2"], params["pw2"])
    wa = put(wa, la["pb2"], params["pb2"])
    for l in range(num_layers):
        wa = put(wa, la[f"lw2_{l}"], params["lw2"][l])
        wa = put(wa, la[f"lb2_{l}"], params["lb2"][l])
        wa = put(wa, la[f"lng_{l}"], params["lng"][l])
        wa = put(wa, la[f"lnb_{l}"], params["lnb"][l])

    wb = put(wb, lb["pw3"], params["pw3"])
    wb = put(wb, lb["pb3"], params["pb3"])
    for l in range(num_layers):
        wb = put(wb, lb[f"lw1_{l}"], params["lw1"][l])
        wb = put(wb, lb[f"lb1_{l}"], params["lb1"][l])
    wb = put(wb, lb["mw1"], params["mw1"])
    wb = put(wb, lb["mb1"], params["mb1"])
    wb = put(wb, lb["mw2"], params["mw2"])
    wb = put(wb, lb["mb2"], params["mb2"])
    wb = put(wb, lb["mw3"], params["mw3"])
    wb = put(wb, lb["mb3"], params["mb3"])
    return wa, wb


# -----------------------------------------------------------------------------
# Fused kernel: ptp_fc MLP + concat + BaselineLayer stack + last_mlp
# -----------------------------------------------------------------------------
def _fused_predictor_kernel(x_ref, ptp_ref, wa_ref, wb_ref, out_ref, z_ref, *,
                            layout, num_layers, eps):
    f32 = jnp.float32
    la, lb = layout["la"], layout["lb"]
    CE, D = layout["CE"], layout["D"]

    def A(name):                              # static slice into the wide slab
        r0, rows, cols = la[name]
        return wa_ref[r0:r0 + rows, :cols]

    def Bw(name):                             # static slice into the narrow slab
        r0, rows, cols = lb[name]
        return wb_ref[r0:r0 + rows, :cols]

    x = x_ref[...]                            # (B, C*E)  -- flattened in wrapper
    ptp = ptp_ref[...]                        # (B, P)

    # --- ptp_fc: MLP(P, 256, E, 3): ReLU after first two linears ------------
    h = jnp.maximum(jnp.dot(ptp, A("pw1"), preferred_element_type=f32) + A("pb1"), 0.0)
    h = jnp.maximum(jnp.dot(h, A("pw2"), preferred_element_type=f32) + A("pb2"), 0.0)
    p = jnp.dot(h, Bw("pw3"), preferred_element_type=f32) + Bw("pb3")          # (B, E)

    # --- z = cat((x, ptp_fc(ptp)), dim=1), built in VMEM scratch -------------
    # (lane offset CE = C*E = 256 is 128-aligned; avoids a concatenate relayout)
    z_ref[:, :CE] = x
    z_ref[:, CE:D] = p
    z = z_ref[...]                                                               # (B, D)

    # --- BaselineLayer stack: FFN -> residual -> LayerNorm --------------------
    for l in range(num_layers):               # tiny, unrolled; all slices static
        ff = jnp.maximum(
            jnp.dot(z, Bw(f"lw1_{l}"), preferred_element_type=f32) + Bw(f"lb1_{l}"), 0.0)
        ff = jnp.dot(ff, A(f"lw2_{l}"), preferred_element_type=f32) + A(f"lb2_{l}")
        z = z + ff                            # residual
        mu = jnp.mean(z, axis=-1, keepdims=True)
        ms = jnp.mean(z * z, axis=-1, keepdims=True)
        var = ms - mu * mu                    # one-pass variance (saves a VPU sweep)
        z = (z - mu) * jax.lax.rsqrt(var + eps) * A(f"lng_{l}") + A(f"lnb_{l}")

    # --- last_mlp: MLP(D, E, E, 3) --------------------------------------------
    h = jnp.maximum(jnp.dot(z, Bw("mw1"), preferred_element_type=f32) + Bw("mb1"), 0.0)
    h = jnp.maximum(jnp.dot(h, Bw("mw2"), preferred_element_type=f32) + Bw("mb2"), 0.0)
    out_ref[...] = jnp.dot(h, Bw("mw3"), preferred_element_type=f32) + Bw("mb3")


# -----------------------------------------------------------------------------
# Wrapper: single pallas_call (no grid, everything VMEM-resident)
# -----------------------------------------------------------------------------
def predictor_forward(x, ptp, latent, wa, wb, *, layout, num_layers,
                      E, F, eps=1e-5):
    """Mirrors BaselineHiddenPredictor_ptp.forward.  `latent` is unused."""
    del latent
    B = x.shape[0]
    P = ptp.shape[1]
    CE, D = layout["CE"], layout["D"]
    x_flat = x.reshape(B, -1)                 # x.view(bs, -1)

    kern = functools.partial(_fused_predictor_kernel, layout=layout,
                             num_layers=num_layers, eps=eps)

    flops = 2 * B * (P * _H_PTP + _H_PTP * _H_PTP + _H_PTP * E
                     + num_layers * 2 * D * F
                     + D * E + E * E + E * E)
    bytes_accessed = 4 * (x_flat.size + ptp.size + wa.size + wb.size + B * E)

    return pl.pallas_call(
        kern,
        out_shape=jax.ShapeDtypeStruct((B, E), jnp.float32),
        scratch_shapes=[pltpu.VMEM((B, D), jnp.float32)],
        cost_estimate=pl.CostEstimate(flops=flops,
                                      transcendentals=num_layers * B,
                                      bytes_accessed=bytes_accessed),
    )(x_flat, ptp, wa, wb)


# -----------------------------------------------------------------------------
# Deterministic parameter construction (no checkpoint loading)
# -----------------------------------------------------------------------------
def _xavier(key, shape):
    fan_in, fan_out = shape
    limit = (6.0 / (fan_in + fan_out)) ** 0.5
    return jax.random.uniform(key, shape, jnp.float32, -limit, limit)


def _bias(key, fan_in, n):
    limit = 1.0 / (fan_in ** 0.5)
    return jax.random.uniform(key, (1, n), jnp.float32, -limit, limit)


def build_params(key, E, C, P, F, num_layers):
    D = (C + 1) * E
    ks = iter(jax.random.split(key, 12 + 6 * num_layers))
    params = {}
    # ptp_fc = MLP(P, 256, E, 3)
    params["pw1"] = _xavier(next(ks), (P, _H_PTP));     params["pb1"] = _bias(next(ks), P, _H_PTP)
    params["pw2"] = _xavier(next(ks), (_H_PTP, _H_PTP)); params["pb2"] = _bias(next(ks), _H_PTP, _H_PTP)
    params["pw3"] = _xavier(next(ks), (_H_PTP, E));      params["pb3"] = _bias(next(ks), _H_PTP, E)
    # BaselineLayer stack (stacked along a leading layer axis)
    params["lw1"] = jnp.stack([_xavier(next(ks), (D, F)) for _ in range(num_layers)])
    params["lb1"] = jnp.stack([_bias(next(ks), D, F) for _ in range(num_layers)])
    params["lw2"] = jnp.stack([_xavier(next(ks), (F, D)) for _ in range(num_layers)])
    params["lb2"] = jnp.stack([_bias(next(ks), F, D) for _ in range(num_layers)])
    params["lng"] = jnp.stack([1.0 + 0.1 * jax.random.normal(next(ks), (1, D), jnp.float32)
                               for _ in range(num_layers)])
    params["lnb"] = jnp.stack([0.1 * jax.random.normal(next(ks), (1, D), jnp.float32)
                               for _ in range(num_layers)])
    # last_mlp = MLP(D, E, E, 3)
    params["mw1"] = _xavier(next(ks), (D, E)); params["mb1"] = _bias(next(ks), D, E)
    params["mw2"] = _xavier(next(ks), (E, E)); params["mb2"] = _bias(next(ks), E, E)
    params["mw3"] = _xavier(next(ks), (E, E)); params["mb3"] = _bias(next(ks), E, E)
    return params


# -----------------------------------------------------------------------------
# Pure-JAX reference (same math) for a correctness check
# -----------------------------------------------------------------------------
def reference_forward(x, ptp, latent, params, *, num_layers, eps=1e-5):
    del latent
    B = x.shape[0]
    xf = x.reshape(B, -1)
    h = jnp.maximum(ptp @ params["pw1"] + params["pb1"], 0.0)
    h = jnp.maximum(h @ params["pw2"] + params["pb2"], 0.0)
    p = h @ params["pw3"] + params["pb3"]
    z = jnp.concatenate([xf, p], axis=1)
    for l in range(num_layers):
        ff = jnp.maximum(z @ params["lw1"][l] + params["lb1"][l], 0.0)
        ff = ff @ params["lw2"][l] + params["lb2"][l]
        z = z + ff
        mu = jnp.mean(z, axis=-1, keepdims=True)
        var = jnp.mean((z - mu) ** 2, axis=-1, keepdims=True)
        z = (z - mu) * jax.lax.rsqrt(var + eps) * params["lng"][l] + params["lnb"][l]
    h = jnp.maximum(z @ params["mw1"] + params["mb1"], 0.0)
    h = jnp.maximum(h @ params["mw2"] + params["mb2"], 0.0)
    return h @ params["mw3"] + params["mb3"]


# -----------------------------------------------------------------------------
if __name__ == "__main__":
    embedding_size = 32            # E
    num_conditional_frames = 8     # C   -> input_dim D = (C+1)*E = 288
    latent_size = 16
    ptp_size = 16
    dim_feedforward = 64           # F
    num_layers = 2
    B = 2

    key = jax.random.PRNGKey(0)
    kx, kptp, klat, kp = jax.random.split(key, 4)
    params = build_params(kp, embedding_size, num_conditional_frames, ptp_size,
                          dim_feedforward, num_layers)

    layout = build_layout(embedding_size, num_conditional_frames, ptp_size,
                          dim_feedforward, num_layers)
    wa, wb = pack_params(params, layout, num_layers)

    x = jax.random.normal(kx, (B, num_conditional_frames, embedding_size), jnp.float32)
    ptp = jax.random.normal(kptp, (B, ptp_size), jnp.float32)
    latent = jax.random.normal(klat, (B, latent_size), jnp.float32)   # unused (matches PyTorch)

    out = predictor_forward(x, ptp, latent, wa, wb, layout=layout,
                            num_layers=num_layers, E=embedding_size, F=dim_feedforward)
    out = jax.block_until_ready(out)
    assert out.shape == (B, embedding_size)

    ref = reference_forward(x, ptp, latent, params, num_layers=num_layers)
    np.testing.assert_allclose(np.asarray(out), np.asarray(ref), rtol=1e-4, atol=1e-4)

    print("KERNEL_OK")
</pallas_src>

<mosaic_0001>
module attributes {stable_mosaic.version = 11 : i64} {
  func.func @_fused_predictor_kernel(%arg0: memref<2x256xf32, #tpu.memory_space<vmem>>, %arg1: memref<2x16xf32, #tpu.memory_space<vmem>>, %arg2: memref<464x288xf32, #tpu.memory_space<vmem>>, %arg3: memref<1232x64xf32, #tpu.memory_space<vmem>>, %arg4: memref<2x32xf32, #tpu.memory_space<vmem>>, %arg5: memref<2x288xf32, #tpu.memory_space<vmem>>) attributes {dimension_semantics = [], scalar_prefetch = 0 : i64, scratch_operands = 1 : i64, tpu.core_type = #tpu.core_type<tc>} {
    %c0 = arith.constant 0 : index
    %c0_0 = arith.constant 0 : index
    %0 = vector.load %arg0[%c0, %c0_0] : memref<2x256xf32, #tpu.memory_space<vmem>>, vector<2x256xf32>
    %c0_1 = arith.constant 0 : index
    %c0_2 = arith.constant 0 : index
    %1 = vector.load %arg1[%c0_1, %c0_2] : memref<2x16xf32, #tpu.memory_space<vmem>>, vector<2x16xf32>
    %c0_3 = arith.constant 0 : index
    %c0_4 = arith.constant 0 : index
    %2 = vector.load %arg2[%c0_3, %c0_4] : memref<464x288xf32, #tpu.memory_space<vmem>>, vector<16x256xf32>
    %cst = arith.constant dense<0.000000e+00> : vector<2x256xf32>
    %3 = tpu.matmul %1, %2, %cst {dimension_numbers = #tpu.dot_dimension_numbers<[1], [0], [0], [1], [0, 0, 1, 1], [], []>} : vector<2x16xf32>, vector<16x256xf32>, vector<2x256xf32> -> vector<2x256xf32>
    %c16 = arith.constant 16 : index
    %c0_5 = arith.constant 0 : index
    %4 = vector.load %arg2[%c16, %c0_5] : memref<464x288xf32, #tpu.memory_space<vmem>>, vector<1x256xf32>
    %5 = vector.broadcast %4 : vector<1x256xf32> to vector<2x256xf32>
    %6 = arith.addf %3, %5 : vector<2x256xf32>
    %cst_6 = arith.constant 0.000000e+00 : f32
    %7 = vector.broadcast %cst_6 : f32 to vector<2x256xf32>
    %8 = arith.maximumf %6, %7 : vector<2x256xf32>
    %c24 = arith.constant 24 : index
    %c0_7 = arith.constant 0 : index
    %9 = vector.load %arg2[%c24, %c0_7] : memref<464x288xf32, #tpu.memory_space<vmem>>, vector<256x256xf32>
    %cst_8 = arith.constant dense<0.000000e+00> : vector<2x256xf32>
    %10 = tpu.matmul %8, %9, %cst_8 {dimension_numbers = #tpu.dot_dimension_numbers<[1], [0], [0], [1], [0, 0, 1, 1], [], []>} : vector<2x256xf32>, vector<256x256xf32>, vector<2x256xf32> -> vector<2x256xf32>
    %c280 = arith.constant 280 : index
    %c0_9 = arith.constant 0 : index
    %11 = vector.load %arg2[%c280, %c0_9] : memref<464x288xf32, #tpu.memory_space<vmem>>, vector<1x256xf32>
    %12 = vector.broadcast %11 : vector<1x256xf32> to vector<2x256xf32>
    %13 = arith.addf %10, %12 : vector<2x256xf32>
    %cst_10 = arith.constant 0.000000e+00 : f32
    %14 = vector.broadcast %cst_10 : f32 to vector<2x256xf32>
    %15 = arith.maximumf %13, %14 : vector<2x256xf32>
    %c0_11 = arith.constant 0 : index
    %c0_12 = arith.constant 0 : index
    %16 = vector.load %arg3[%c0_11, %c0_12] : memref<1232x64xf32, #tpu.memory_space<vmem>>, vector<256x32xf32>
    %cst_13 = arith.constant dense<0.000000e+00> : vector<2x32xf32>
    %17 = tpu.matmul %15, %16, %cst_13 {dimension_numbers = #tpu.dot_dimension_numbers<[1], [0], [0], [1], [0, 0, 1, 1], [], []>} : vector<2x256xf32>, vector<256x32xf32>, vector<2x32xf32> -> vector<2x32xf32>
    %c256 = arith.constant 256 : index
    %c0_14 = arith.constant 0 : index
    %18 = vector.load %arg3[%c256, %c0_14] : memref<1232x64xf32, #tpu.memory_space<vmem>>, vector<1x32xf32>
    %19 = vector.broadcast %18 : vector<1x32xf32> to vector<2x32xf32>
    %20 = arith.addf %17, %19 : vector<2x32xf32>
    %c0_15 = arith.constant 0 : index
    %c0_16 = arith.constant 0 : index
    %21 = vector.load %arg5[%c0_15, %c0_16] : memref<2x288xf32, #tpu.memory_space<vmem>>, vector<2x256xf32>
    tpu.vector_store %arg5[%c0_15, %c0_16], %0 {strides = array<i32>} : memref<2x288xf32, #tpu.memory_space<vmem>>, vector<2x256xf32>,
    %c0_17 = arith.constant 0 : index
    %c256_18 = arith.constant 256 : index
    %22 = vector.load %arg5[%c0_17, %c256_18] : memref<2x288xf32, #tpu.memory_space<vmem>>, vector<2x32xf32>
    tpu.vector_store %arg5[%c0_17, %c256_18], %20 {strides = array<i32>} : memref<2x288xf32, #tpu.memory_space<vmem>>, vector<2x32xf32>,
    %c0_19 = arith.constant 0 : index
    %c0_20 = arith.constant 0 : index
    %23 = vector.load %arg5[%c0_19, %c0_20] : memref<2x288xf32, #tpu.memory_space<vmem>>, vector<2x288xf32>
    %c264 = arith.constant 264 : index
    %c0_21 = arith.constant 0 : index
    %24 = vector.load %arg3[%c264, %c0_21] : memref<1232x64xf32, #tpu.memory_space<vmem>>, vector<288x64xf32>
    %cst_22 = arith.constant dense<0.000000e+00> : vector<2x64xf32>
    %25 = tpu.matmul %23, %24, %cst_22 {dimension_numbers = #tpu.dot_dimension_numbers<[1], [0], [0], [1], [0, 0, 1, 1], [], []>} : vector<2x288xf32>, vector<288x64xf32>, vector<2x64xf32> -> vector<2x64xf32>
    %c552 = arith.constant 552 : index
    %c0_23 = arith.constant 0 : index
    %26 = vector.load %arg3[%c552, %c0_23] : memref<1232x64xf32, #tpu.memory_space<vmem>>, vector<1x64xf32>
    %27 = vector.broadcast %26 : vector<1x64xf32> to vector<2x64xf32>
    %28 = arith.addf %25, %27 : vector<2x64xf32>
    %cst_24 = arith.constant 0.000000e+00 : f32
    %29 = vector.broadcast %cst_24 : f32 to vector<2x64xf32>
    %30 = arith.maximumf %28, %29 : vector<2x64xf32>
    %c288 = arith.constant 288 : index
    %c0_25 = arith.constant 0 : index
    %31 = vector.load %arg2[%c288, %c0_25] : memref<464x288xf32, #tpu.memory_space<vmem>>, vector<64x288xf32>
    %cst_26 = arith.constant dense<0.000000e+00> : vector<2x288xf32>
    %32 = tpu.matmul %30, %31, %cst_26 {dimension_numbers = #tpu.dot_dimension_numbers<[1], [0], [0], [1], [0, 0, 1, 1], [], []>} : vector<2x64xf32>, vector<64x288xf32>, vector<2x288xf32> -> vector<2x288xf32>
    %c352 = arith.constant 352 : index
    %c0_27 = arith.constant 0 : index
    %33 = vector.load %arg2[%c352, %c0_27] : memref<464x288xf32, #tpu.memory_space<vmem>>, vector<1x288xf32>
    %34 = vector.broadcast %33 : vector<1x288xf32> to vector<2x288xf32>
    %35 = arith.addf %32, %34 : vector<2x288xf32>
    %36 = arith.addf %23, %35 : vector<2x288xf32>
    %cst_28 = arith.constant dense<0.000000e+00> : vector<2xf32>
    %37 = vector.multi_reduction <add>, %36, %cst_28 [1] : vector<2x288xf32> to vector<2xf32>
    %38 = vector.shape_cast %37 : vector<2xf32> to vector<2x1xf32>
    %cst_29 = arith.constant 2.880000e+02 : f32
    %39 = vector.broadcast %cst_29 : f32 to vector<2x1xf32>
    %40 = arith.divf %38, %39 : vector<2x1xf32>
    %41 = arith.mulf %36, %36 : vector<2x288xf32>
    %cst_30 = arith.constant dense<0.000000e+00> : vector<2xf32>
    %42 = vector.multi_reduction <add>, %41, %cst_30 [1] : vector<2x288xf32> to vector<2xf32>
    %43 = vector.shape_cast %42 : vector<2xf32> to vector<2x1xf32>
    %cst_31 = arith.constant 2.880000e+02 : f32
    %44 = vector.broadcast %cst_31 : f32 to vector<2x1xf32>
    %45 = arith.divf %43, %44 : vector<2x1xf32>
    %46 = arith.mulf %40, %40 : vector<2x1xf32>
    %47 = arith.subf %45, %46 : vector<2x1xf32>
    %48 = vector.broadcast %40 : vector<2x1xf32> to vector<2x288xf32>
    %49 = arith.subf %36, %48 : vector<2x288xf32>
    %cst_32 = arith.constant 9.99999974E-6 : f32
    %50 = vector.broadcast %cst_32 : f32 to vector<2x1xf32>
    %51 = arith.addf %47, %50 : vector<2x1xf32>
    %52 = math.rsqrt %51 : vector<2x1xf32>
    %53 = vector.broadcast %52 : vector<2x1xf32> to vector<2x288xf32>
    %54 = arith.mulf %49, %53 : vector<2x288xf32>
    %c360 = arith.constant 360 : index
    %c0_33 = arith.constant 0 : index
    %55 = vector.load %arg2[%c360, %c0_33] : memref<464x288xf32, #tpu.memory_space<vmem>>, vector<1x288xf32>
    %56 = vector.broadcast %55 : vector<1x288xf32> to vector<2x288xf32>
    %57 = arith.mulf %54, %56 : vector<2x288xf32>
    %c368 = arith.constant 368 : index
    %c0_34 = arith.constant 0 : index
    %58 = vector.load %arg2[%c368, %c0_34] : memref<464x288xf32, #tpu.memory_space<vmem>>, vector<1x288xf32>
    %59 = vector.broadcast %58 : vector<1x288xf32> to vector<2x288xf32>
    %60 = arith.addf %57, %59 : vector<2x288xf32>
    %c560 = arith.constant 560 : index
    %c0_35 = arith.constant 0 : index
    %61 = vector.load %arg3[%c560, %c0_35] : memref<1232x64xf32, #tpu.memory_space<vmem>>, vector<288x64xf32>
    %cst_36 = arith.constant dense<0.000000e+00> : vector<2x64xf32>
    %62 = tpu.matmul %60, %61, %cst_36 {dimension_numbers = #tpu.dot_dimension_numbers<[1], [0], [0], [1], [0, 0, 1, 1], [], []>} : vector<2x288xf32>, vector<288x64xf32>, vector<2x64xf32> -> vector<2x64xf32>
    %c848 = arith.constant 848 : index
    %c0_37 = arith.constant 0 : index
    %63 = vector.load %arg3[%c848, %c0_37] : memref<1232x64xf32, #tpu.memory_space<vmem>>, vector<1x64xf32>
    %64 = vector.broadcast %63 : vector<1x64xf32> to vector<2x64xf32>
    %65 = arith.addf %62, %64 : vector<2x64xf32>
    %cst_38 = arith.constant 0.000000e+00 : f32
    %66 = vector.broadcast %cst_38 : f32 to vector<2x64xf32>
    %67 = arith.maximumf %65, %66 : vector<2x64xf32>
    %c376 = arith.constant 376 : index
    %c0_39 = arith.constant 0 : index
    %68 = vector.load %arg2[%c376, %c0_39] : memref<464x288xf32, #tpu.memory_space<vmem>>, vector<64x288xf32>
    %cst_40 = arith.constant dense<0.000000e+00> : vector<2x288xf32>
    %69 = tpu.matmul %67, %68, %cst_40 {dimension_numbers = #tpu.dot_dimension_numbers<[1], [0], [0], [1], [0, 0, 1, 1], [], []>} : vector<2x64xf32>, vector<64x288xf32>, vector<2x288xf32> -> vector<2x288xf32>
    %c440 = arith.constant 440 : index
    %c0_41 = arith.constant 0 : index
    %70 = vector.load %arg2[%c440, %c0_41] : memref<464x288xf32, #tpu.memory_space<vmem>>, vector<1x288xf32>
    %71 = vector.broadcast %70 : vector<1x288xf32> to vector<2x288xf32>
    %72 = arith.addf %69, %71 : vector<2x288xf32>
    %73 = arith.addf %60, %72 : vector<2x288xf32>
    %cst_42 = arith.constant dense<0.000000e+00> : vector<2xf32>
    %74 = vector.multi_reduction <add>, %73, %cst_42 [1] : vector<2x288xf32> to vector<2xf32>
    %75 = vector.shape_cast %74 : vector<2xf32> to vector<2x1xf32>
    %cst_43 = arith.constant 2.880000e+02 : f32
    %76 = vector.broadcast %cst_43 : f32 to vector<2x1xf32>
    %77 = arith.divf %75, %76 : vector<2x1xf32>
    %78 = arith.mulf %73, %73 : vector<2x288xf32>
    %cst_44 = arith.constant dense<0.000000e+00> : vector<2xf32>
    %79 = vector.multi_reduction <add>, %78, %cst_44 [1] : vector<2x288xf32> to vector<2xf32>
    %80 = vector.shape_cast %79 : vector<2xf32> to vector<2x1xf32>
    %cst_45 = arith.constant 2.880000e+02 : f32
    %81 = vector.broadcast %cst_45 : f32 to vector<2x1xf32>
    %82 = arith.divf %80, %81 : vector<2x1xf32>
    %83 = arith.mulf %77, %77 : vector<2x1xf32>
    %84 = arith.subf %82, %83 : vector<2x1xf32>
    %85 = vector.broadcast %77 : vector<2x1xf32> to vector<2x288xf32>
    %86 = arith.subf %73, %85 : vector<2x288xf32>
    %cst_46 = arith.constant 9.99999974E-6 : f32
    %87 = vector.broadcast %cst_46 : f32 to vector<2x1xf32>
    %88 = arith.addf %84, %87 : vector<2x1xf32>
    %89 = math.rsqrt %88 : vector<2x1xf32>
    %90 = vector.broadcast %89 : vector<2x1xf32> to vector<2x288xf32>
    %91 = arith.mulf %86, %90 : vector<2x288xf32>
    %c448 = arith.constant 448 : index
    %c0_47 = arith.constant 0 : index
    %92 = vector.load %arg2[%c448, %c0_47] : memref<464x288xf32, #tpu.memory_space<vmem>>, vector<1x288xf32>
    %93 = vector.broadcast %92 : vector<1x288xf32> to vector<2x288xf32>
    %94 = arith.mulf %91, %93 : vector<2x288xf32>
    %c456 = arith.constant 456 : index
    %c0_48 = arith.constant 0 : index
    %95 = vector.load %arg2[%c456, %c0_48] : memref<464x288xf32, #tpu.memory_space<vmem>>, vector<1x288xf32>
    %96 = vector.broadcast %95 : vector<1x288xf32> to vector<2x288xf32>
    %97 = arith.addf %94, %96 : vector<2x288xf32>
    %c856 = arith.constant 856 : index
    %c0_49 = arith.constant 0 : index
    %98 = vector.load %arg3[%c856, %c0_49] : memref<1232x64xf32, #tpu.memory_space<vmem>>, vector<288x32xf32>
    %cst_50 = arith.constant dense<0.000000e+00> : vector<2x32xf32>
    %99 = tpu.matmul %97, %98, %cst_50 {dimension_numbers = #tpu.dot_dimension_numbers<[1], [0], [0], [1], [0, 0, 1, 1], [], []>} : vector<2x288xf32>, vector<288x32xf32>, vector<2x32xf32> -> vector<2x32xf32>
    %c1144 = arith.constant 1144 : index
    %c0_51 = arith.constant 0 : index
    %100 = vector.load %arg3[%c1144, %c0_51] : memref<1232x64xf32, #tpu.memory_space<vmem>>, vector<1x32xf32>
    %101 = vector.broadcast %100 : vector<1x32xf32> to vector<2x32xf32>
    %102 = arith.addf %99, %101 : vector<2x32xf32>
    %cst_52 = arith.constant 0.000000e+00 : f32
    %103 = vector.broadcast %cst_52 : f32 to vector<2x32xf32>
    %104 = arith.maximumf %102, %103 : vector<2x32xf32>
    %c1152 = arith.constant 1152 : index
    %c0_53 = arith.constant 0 : index
    %105 = vector.load %arg3[%c1152, %c0_53] : memref<1232x64xf32, #tpu.memory_space<vmem>>, vector<32x32xf32>
    %cst_54 = arith.constant dense<0.000000e+00> : vector<2x32xf32>
    %106 = tpu.matmul %104, %105, %cst_54 {dimension_numbers = #tpu.dot_dimension_numbers<[1], [0], [0], [1], [0, 0, 1, 1], [], []>} : vector<2x32xf32>, vector<32x32xf32>, vector<2x32xf32> -> vector<2x32xf32>
    %c1184 = arith.constant 1184 : index
    %c0_55 = arith.constant 0 : index
    %107 = vector.load %arg3[%c1184, %c0_55] : memref<1232x64xf32, #tpu.memory_space<vmem>>, vector<1x32xf32>
    %108 = vector.broadcast %107 : vector<1x32xf32> to vector<2x32xf32>
    %109 = arith.addf %106, %108 : vector<2x32xf32>
    %cst_56 = arith.constant 0.000000e+00 : f32
    %110 = vector.broadcast %cst_56 : f32 to vector<2x32xf32>
    %111 = arith.maximumf %109, %110 : vector<2x32xf32>
    %c1192 = arith.constant 1192 : index
    %c0_57 = arith.constant 0 : index
    %112 = vector.load %arg3[%c1192, %c0_57] : memref<1232x64xf32, #tpu.memory_space<vmem>>, vector<32x32xf32>
    %cst_58 = arith.constant dense<0.000000e+00> : vector<2x32xf32>
    %113 = tpu.matmul %111, %112, %cst_58 {dimension_numbers = #tpu.dot_dimension_numbers<[1], [0], [0], [1], [0, 0, 1, 1], [], []>} : vector<2x32xf32>, vector<32x32xf32>, vector<2x32xf32> -> vector<2x32xf32>
    %c1224 = arith.constant 1224 : index
    %c0_59 = arith.constant 0 : index
    %114 = vector.load %arg3[%c1224, %c0_59] : memref<1232x64xf32, #tpu.memory_space<vmem>>, vector<1x32xf32>
    %115 = vector.broadcast %114 : vector<1x32xf32> to vector<2x32xf32>
    %116 = arith.addf %113, %115 : vector<2x32xf32>
    %c0_60 = arith.constant 0 : index
    %c0_61 = arith.constant 0 : index
    %117 = vector.load %arg4[%c0_60, %c0_61] : memref<2x32xf32, #tpu.memory_space<vmem>>, vector<2x32xf32>
    tpu.vector_store %arg4[%c0_60, %c0_61], %116 {strides = array<i32>} : memref<2x32xf32, #tpu.memory_space<vmem>>, vector<2x32xf32>,
    return
  }
}

</mosaic_0001>

<bundles_post_ra>
// kernel: tpu_custom_call.1
= control target key start
LH: loop header
LB: loop body
LE: loop exit
PB: predicated region body
PF: predicated region fallthrough
CT: control target
= control target key end

     0   :  { %v2208_v4 = vmov 0.0   ;;  %vm37_vm0 = vcmask 130048   ;;  %s3254_s0 = inlined_call_operand.vmem [shape: f32[2,256], index: 0, kind: input, shape index: {}]   ;;  %s3255_s1 = inlined_call_operand.vmem [shape: f32[2,16], index: 1, kind: input, shape index: {}]   ;;  %s3256_s2 = inlined_call_operand.vmem [shape: f32[464,288], index: 2, kind: input, shape index: {}]   ;;  %s3257_s3 = inlined_call_operand.vmem [shape: f32[1232,64], index: 3, kind: input, shape index: {}]   ;;  %s3258_s4 = inlined_call_operand.hbm [shape: f32[2,32], index: 4, kind: output, shape index: {}]  }
   0x1   :  { %v23_v0 = vld [vmem:[%s3256_s2 + $0x20] sm:$0xff]  ;;  %v22_v1 = vld [vmem:[%s3256_s2 + $0x18] sm:$0xff]  ;;  %v21_v2 = vld [vmem:[%s3256_s2 + $0x8] sm:$0xff]  ;;  %105 = vmatprep.mubr.f32.mxu0 %v2208_v4 }
   0x2   :  { %69 = vmatprep.subr.mxu0 %v23_v0  ;;  %v20_v3 = vld [vmem:[%s3256_s2] sm:$0xff]  ;;  %v145_v6 = vld [vmem:[%s3256_s2 + $0x1b8] sm:$0xff]  ;;  %v144_v7 = vld [vmem:[%s3256_s2 + $0x1b0] sm:$0xff] }
   0x3   :  { %v19_v5 = vld [vmem:[%s3255_s1] sm:$0x3]  ;;  %70 = vmatpush1.msra.mxu0 %v22_v1  ;;  %191 = vmatprep.subr.mxu1 %v145_v6  ;;  %v142_v9 = vld [vmem:[%s3256_s2 + $0x198] sm:$0xff]  ;;  %v141_v10 = vld [vmem:[%s3256_s2 + $0x188] sm:$0xff] }
   0x4   :  { %v143_v8 = vld [vmem:[%s3256_s2 + $0x1a0] sm:$0xff]  ;;  %71 = vmatprep.subr.mxu0 %v21_v2  ;;  %192 = vmatpush1.msra.mxu1 %v144_v7  ;;  %v139_v12 = vld [vmem:[%s3256_s2 + $0x170] sm:$0xff]  ;;  %v138_v13 = vld [vmem:[%s3256_s2 + $0x168] sm:$0xff] }
   0x5   :  { %72 = vmatpush1.msra.mxu0 %v20_v3  ;;  %193 = vmatprep.subr.mxu1 %v143_v8  ;;  %v140_v11 = vld [vmem:[%s3256_s2 + $0x180] sm:$0xff]  ;;  %v137_v14 = vld [vmem:[%s3256_s2 + $0x158] sm:$0xff]  ;;  %v136_v15 = vld [vmem:[%s3256_s2 + $0x150] sm:$0xff] }
   0x6   :  { %1877 = vmatmul.mubr.msk.f32.vlgmr.msra.gmra.mxu0 %vm37_vm0, %v19_v5  ;;  %194 = vmatpush1.msra.mxu1 %v142_v9  ;;  %v135_v16 = vld [vmem:[%s3256_s2 + $0x140] sm:$0xff]  ;;  %v134_v17 = vld [vmem:[%s3256_s2 + $0x138] sm:$0xff]  ;;  %v133_v18 = vld [vmem:[%s3256_s2 + $0x128] sm:$0xff] }
   0x7   :  { %195 = vmatprep.subr.mxu1 %v141_v10  ;;  %v132_v19 = vld [vmem:[%s3256_s2 + $0x120] sm:$0xff]  ;;  %v131_v20 = vld [vmem:[%s3256_s2 + $0x110] sm:$0xff]  ;;  %v130_v21 = vld [vmem:[%s3256_s2 + $0x108] sm:$0xff] }
   0x8   :  { %196 = vmatpush1.msra.mxu1 %v140_v11  ;;  %v129_v22 = vld [vmem:[%s3256_s2 + $0xf8] sm:$0xff]  ;;  %v128_v23 = vld [vmem:[%s3256_s2 + $0xf0] sm:$0xff]  ;;  %v127_v24 = vld [vmem:[%s3256_s2 + $0xe0] sm:$0xff] }
   0x9   :  { %197 = vmatprep.subr.mxu1 %v139_v12  ;;  %v126_v25 = vld [vmem:[%s3256_s2 + $0xd8] sm:$0xff]  ;;  %v125_v26 = vld [vmem:[%s3256_s2 + $0xc8] sm:$0xff]  ;;  %v124_v27 = vld [vmem:[%s3256_s2 + $0xc0] sm:$0xff] }
   0xa   :  { %198 = vmatpush1.msra.mxu1 %v138_v13 }
   0xb   :  { %199 = vmatprep.subr.mxu1 %v137_v14 }
   0xc   :  { %200 = vmatpush1.msra.mxu1 %v136_v15 }
   0xd   :  { %201 = vmatprep.subr.mxu1 %v135_v16 }
   0xe   :  { %202 = vmatpush1.msra.mxu1 %v134_v17 }
   0xf   :  { %203 = vmatprep.subr.mxu1 %v133_v18 }
  0x10   :  { %204 = vmatpush1.msra.mxu1 %v132_v19 }
  0x11   :  { %205 = vmatprep.subr.mxu1 %v131_v20 }
  0x12   :  { %206 = vmatpush1.msra.mxu1 %v130_v21 }
  0x13   :  { %207 = vmatprep.subr.mxu1 %v129_v22 }
  0x14   :  { %208 = vmatpush1.msra.mxu1 %v128_v23 }
  0x15   :  { %209 = vmatprep.subr.mxu1 %v127_v24 }
  0x16   :  { %9 = vsyncpa [#allocation4], 0  ;;  %210 = vmatpush1.msra.mxu1 %v126_v25  ;;  %v123_v28 = vld [vmem:[%s3256_s2 + $0xb0] sm:$0xff]  ;;  %v122_v29 = vld [vmem:[%s3256_s2 + $0xa8] sm:$0xff]  ;;  %vm2209_vm1 = vmmov 0   ;;  %vm372_vm2 = vcmask 254976  }
  0x17   :  { %211 = vmatprep.subr.mxu1 %v125_v26  ;;  %v121_v30 = vld [vmem:[%s3256_s2 + $0x98] sm:$0xff]  ;;  %v120_v31 = vld [vmem:[%s3256_s2 + $0x90] sm:$0xff]  ;;  %v119_v32 = vld [vmem:[%s3256_s2 + $0x80] sm:$0xff]  ;;  %vm435_vm3 = vcmask 261120   ;;  %vm621_vm4 = vcmask 523264   ;;  %vm807_vm5 = vcmask 1041408  }
  0x18   :  { %212 = vmatpush1.msra.mxu1 %v124_v27  ;;  %v118_v33 = vld [vmem:[%s3256_s2 + $0x78] sm:$0xff]  ;;  %v117_v34 = vld [vmem:[%s3256_s2 + $0x68] sm:$0xff]  ;;  %v116_v35 = vld [vmem:[%s3256_s2 + $0x60] sm:$0xff]  ;;  %s2212_s23 = smov [#allocation3]  }
  0x19   :  { %213 = vmatprep.subr.mxu1 %v123_v28  ;;  %v115_v36 = vld [vmem:[%s3256_s2 + $0x50] sm:$0xff]  ;;  %v114_v37 = vld [vmem:[%s3256_s2 + $0x48] sm:$0xff]  ;;  %v177_v38 = vld [vmem:[%s3256_s2 + $0x338] sm:$0xff]  ;;  %s1868_s24 = sshll.u32 %s2212_s23, 4  ;;  %s1869_s24 = int_to_ptr.vmem [resolvable:$true] %s1868_s24 }
  0x1a   :  { %214 = vmatpush1.msra.mxu1 %v122_v29  ;;  %v176_v39 = vld [vmem:[%s3256_s2 + $0x330] sm:$0xff]  ;;  %v175_v40 = vld [vmem:[%s3256_s2 + $0x320] sm:$0xff]  ;;  %v174_v41 = vld [vmem:[%s3256_s2 + $0x318] sm:$0xff]  ;;  %s2186_s25 = scalar_lea.vmem %s1869_s24, 32  ;;  %p2191_p1 = scmp.lt.s32.totalorder %s1869_s24, %s1869_s24 }
  0x1b   :  { %215 = vmatprep.subr.mxu1 %v121_v30  ;;  %v173_v42 = vld [vmem:[%s3256_s2 + $0x308] sm:$0xff]  ;;  %v172_v43 = vld [vmem:[%s3256_s2 + $0x300] sm:$0xff]  ;;  %v171_v44 = vld [vmem:[%s3256_s2 + $0x2f0] sm:$0xff]  ;;  %p2187_p0 = scmp.ne.s32.totalorder %s1869_s24, %s2186_s25  ;;  %p2192_p2 = scmp.lt.s32.totalorder %s2186_s25, %s2186_s25 }
  0x1c   :  { %216 = vmatpush1.msra.mxu1 %v120_v31  ;;  %v170_v45 = vld [vmem:[%s3256_s2 + $0x2e8] sm:$0xff]  ;;  %v169_v46 = vld [vmem:[%s3256_s2 + $0x2d8] sm:$0xff]  ;;  %v168_v47 = vld [vmem:[%s3256_s2 + $0x2d0] sm:$0xff]  ;;  %v27_v31 = vlaneseq }
  0x1d   :  { %217 = vmatprep.subr.mxu1 %v119_v32  ;;  %v167_v48 = vld [vmem:[%s3256_s2 + $0x2c0] sm:$0xff]  ;;  %v166_v49 = vld [vmem:[%s3256_s2 + $0x2b8] sm:$0xff]  ;;  %v165_v50 = vld [vmem:[%s3256_s2 + $0x2a8] sm:$0xff]  ;;  %p2193_p3 = por %p2192_p2, %p2191_p1 }
  0x1e   :  { %218 = vmatpush1.msra.mxu1 %v118_v33  ;;  %v164_v51 = vld [vmem:[%s3256_s2 + $0x2a0] sm:$0xff]  ;;  %v163_v52 = vld [vmem:[%s3256_s2 + $0x290] sm:$0xff]  ;;  %v162_v53 = vld [vmem:[%s3256_s2 + $0x288] sm:$0xff]  ;;  %v2519_v32 = vshrl.u32 %v27_v31, 7 }
  0x1f   :  { %219 = vmatprep.subr.mxu1 %v117_v34  ;;  %v161_v54 = vld [vmem:[%s3256_s2 + $0x278] sm:$0xff]  ;;  %v160_v55 = vld [vmem:[%s3256_s2 + $0x270] sm:$0xff]  ;;  %v159_v56 = vld [vmem:[%s3256_s2 + $0x260] sm:$0xff]  ;;  %p2194_p4 = pnand %p2193_p3, %p2187_p0 }
  0x20   :  { %220 = vmatpush1.msra.mxu1 %v116_v35  ;;  %v158_v57 = vld [vmem:[%s3256_s2 + $0x258] sm:$0xff]  ;;  %v157_v58 = vld [vmem:[%s3256_s2 + $0x248] sm:$0xff]  ;;  %v156_v59 = vld [vmem:[%s3256_s2 + $0x240] sm:$0xff]  ;;  %v2522_v33 = vsub.s32 0, %v2519_v32  ;;  %v2528_v35 = vsub.s32 1, %v2519_v32 }
  0x21   :  { %221 = vmatprep.subr.mxu1 %v115_v36  ;;  %v155_v60 = vld [vmem:[%s3256_s2 + $0x230] sm:$0xff]  ;;  %v154_v61 = vld [vmem:[%s3256_s2 + $0x228] sm:$0xff]  ;;  %v153_v62 = vld [vmem:[%s3256_s2 + $0x218] sm:$0xff] }
  0x22   :  { %222 = vmatpush1.msra.mxu1 %v114_v37  ;;  %v152_v63 = vld [vmem:[%s3256_s2 + $0x210] sm:$0xff]  ;;  %v151_v0 = vld [vmem:[%s3256_s2 + $0x200] sm:$0xff]  ;;  %v150_v1 = vld [vmem:[%s3256_s2 + $0x1f8] sm:$0xff] }
  0x23   :  { %223 = vmatprep.subr.mxu1 %v177_v38  ;;  %v149_v2 = vld [vmem:[%s3256_s2 + $0x1e8] sm:$0xff]  ;;  %v148_v3 = vld [vmem:[%s3256_s2 + $0x1e0] sm:$0xff]  ;;  %v147_v5 = vld [vmem:[%s3256_s2 + $0x1d0] sm:$0xff] }
  0x24   :  { %224 = vmatpush2.msra.mxu1 %v176_v39  ;;  %v146_v6 = vld [vmem:[%s3256_s2 + $0x1c8] sm:$0xff]  ;;  %v295_v7 = vld [vmem:[%s3257_s3 + $0xf8] sm:$0xff]  ;;  %v294_v9 = vld [vmem:[%s3257_s3 + $0xf0] sm:$0xff] }
  0x25   :  { %225 = vmatprep.subr.mxu1 %v175_v40  ;;  %v279_v8 = vld [vmem:[%s3257_s3 + $0x78] sm:$0xff]  ;;  %1900 = vmatprep.subr.mxu0 %v295_v7  ;;  %v278_v10 = vld [vmem:[%s3257_s3 + $0x70] sm:$0xff]  ;;  %v293_v11 = vld [vmem:[%s3257_s3 + $0xe8] sm:$0xff] }
  0x26   :  { %226 = vmatpush2.msra.mxu1 %v174_v41  ;;  %1901 = vmatpush3.msra.mxu0 %v279_v8  ;;  %v277_v12 = vld [vmem:[%s3257_s3 + $0x68] sm:$0xff]  ;;  %v292_v13 = vld [vmem:[%s3257_s3 + $0xe0] sm:$0xff]  ;;  %v291_v15 = vld [vmem:[%s3257_s3 + $0xd8] sm:$0xff] }
  0x27   :  { %227 = vmatprep.subr.mxu1 %v173_v42  ;;  %1902 = vmatprep.subr.mxu0 %v294_v9  ;;  %v276_v14 = vld [vmem:[%s3257_s3 + $0x60] sm:$0xff]  ;;  %v275_v16 = vld [vmem:[%s3257_s3 + $0x58] sm:$0xff]  ;;  %v290_v17 = vld [vmem:[%s3257_s3 + $0xd0] sm:$0xff] }
  0x28   :  { %228 = vmatpush2.msra.mxu1 %v172_v43  ;;  %1903 = vmatpush3.msra.mxu0 %v278_v10  ;;  %v274_v18 = vld [vmem:[%s3257_s3 + $0x50] sm:$0xff]  ;;  %v289_v19 = vld [vmem:[%s3257_s3 + $0xc8] sm:$0xff]  ;;  %v288_v21 = vld [vmem:[%s3257_s3 + $0xc0] sm:$0xff] }
  0x29   :  { %229 = vmatprep.subr.mxu1 %v171_v44  ;;  %1904 = vmatprep.subr.mxu0 %v293_v11  ;;  %v273_v20 = vld [vmem:[%s3257_s3 + $0x48] sm:$0xff]  ;;  %v272_v22 = vld [vmem:[%s3257_s3 + $0x40] sm:$0xff]  ;;  %v287_v23 = vld [vmem:[%s3257_s3 + $0xb8] sm:$0xff] }
  0x2a   :  { %230 = vmatpush2.msra.mxu1 %v170_v45  ;;  %1905 = vmatpush3.msra.mxu0 %v277_v12  ;;  %v271_v24 = vld [vmem:[%s3257_s3 + $0x38] sm:$0xff]  ;;  %v286_v25 = vld [vmem:[%s3257_s3 + $0xb0] sm:$0xff]  ;;  %v285_v27 = vld [vmem:[%s3257_s3 + $0xa8] sm:$0xff] }
  0x2b   :  { %231 = vmatprep.subr.mxu1 %v169_v46  ;;  %1906 = vmatprep.subr.mxu0 %v292_v13  ;;  %v270_v26 = vld [vmem:[%s3257_s3 + $0x30] sm:$0xff]  ;;  %v269_v28 = vld [vmem:[%s3257_s3 + $0x28] sm:$0xff]  ;;  %v284_v29 = vld [vmem:[%s3257_s3 + $0xa0] sm:$0xff] }
  0x2c   :  { %232 = vmatpush2.msra.mxu1 %v168_v47  ;;  %1907 = vmatpush3.msra.mxu0 %v276_v14  ;;  %v268_v30 = vld [vmem:[%s3257_s3 + $0x20] sm:$0xff]  ;;  %v1876_v34 = vld [vmem:[%s3256_s2 + $0x30] ss:$8 sm:$0x3]  ;;  %v399_v12 = vld [vmem:[%s3257_s3 + $0x1c8] sm:$0xff] }
  0x2d   :  { %233 = vmatprep.subr.mxu1 %v167_v48  ;;  %1908 = vmatprep.subr.mxu0 %v291_v15  ;;  %v30_v36 = vrot.slane %v1876_v34, %v2522_v33  ;;  %v34_v37 = vrot.slane %v1876_v34, %v2528_v35  ;;  %v283_v44 = vld [vmem:[%s3257_s3 + $0x98] sm:$0xff]  ;;  %v282_v46 = vld [vmem:[%s3257_s3 + $0x90] sm:$0xff]  ;;  %v281_v48 = vld [vmem:[%s3257_s3 + $0x88] sm:$0xff] }
  0x2e   :  { %234 = vmatpush2.msra.mxu1 %v166_v49  ;;  %1909 = vmatpush3.msra.mxu0 %v275_v16  ;;  %v267_v45 = vld [vmem:[%s3257_s3 + $0x18] sm:$0xff]  ;;  %v266_v47 = vld [vmem:[%s3257_s3 + $0x10] sm:$0xff]  ;;  %v265_v49 = vld [vmem:[%s3257_s3 + $0x8] sm:$0xff] }
  0x2f   :  { %235 = vmatprep.subr.mxu1 %v165_v50  ;;  %1910 = vmatprep.subr.mxu0 %v290_v17  ;;  %v280_v50 = vld [vmem:[%s3257_s3 + $0x80] sm:$0xff]  ;;  %v401_v8 = vld [vmem:[%s3257_s3 + $0x1d8] sm:$0xff]  ;;  %v400_v10 = vld [vmem:[%s3257_s3 + $0x1d0] sm:$0xff] }
  0x30   :  { %236 = vmatpush2.msra.mxu1 %v164_v51  ;;  %1911 = vmatpush3.msra.mxu0 %v274_v18  ;;  %v264_v51 = vld [vmem:[%s3257_s3] sm:$0xff]  ;;  %v385_v9 = vld [vmem:[%s3257_s3 + $0x158] sm:$0xff]  ;;  %v384_v11 = vld [vmem:[%s3257_s3 + $0x150] sm:$0xff] }
  0x31   :  { %237 = vmatprep.subr.mxu1 %v163_v52  ;;  %1912 = vmatprep.subr.mxu0 %v289_v19  ;;  %v406_v52 = vld [vmem:[%s3257_s3 + $0x200] sm:$0xff]  ;;  %v383_v13 = vld [vmem:[%s3257_s3 + $0x148] sm:$0xff]  ;;  %v397_v16 = vld [vmem:[%s3257_s3 + $0x1b8] sm:$0xff] }
  0x32   :  { %238 = vmatpush2.msra.mxu1 %v162_v53  ;;  %1913 = vmatpush3.msra.mxu0 %v273_v20  ;;  %v1878_v53 = vld [vmem:[%s3256_s2 + $0x348] ss:$8 sm:$0x3]  ;;  %v386_v7 = vld [vmem:[%s3257_s3 + $0x160] sm:$0xff]  ;;  %v381_v17 = vld [vmem:[%s3257_s3 + $0x138] sm:$0xff] }
  0x33   :  { %239 = vmatprep.subr.mxu1 %v161_v54  ;;  %1914 = vmatprep.subr.mxu0 %v288_v21  ;;  %v184_v54 = vrot.slane %v1878_v53, %v2522_v33  ;;  %v398_v14 = vld [vmem:[%s3257_s3 + $0x1c0] sm:$0xff]  ;;  %v396_v19 = vld [vmem:[%s3257_s3 + $0x1b0] sm:$0xff]  ;;  %v395_v21 = vld [vmem:[%s3257_s3 + $0x1a8] sm:$0xff] }
  0x34   :  { %240 = vmatpush2.msra.mxu1 %v160_v55  ;;  %1915 = vmatpush3.msra.mxu0 %v272_v22  ;;  %v188_v55 = vrot.slane %v1878_v53, %v2528_v35  ;;  %v382_v15 = vld [vmem:[%s3257_s3 + $0x140] sm:$0xff]  ;;  %v380_v20 = vld [vmem:[%s3257_s3 + $0x130] sm:$0xff]  ;;  %v379_v22 = vld [vmem:[%s3257_s3 + $0x128] sm:$0xff] }
  0x35   :  { %241 = vmatprep.subr.mxu1 %v159_v56  ;;  %1916 = vmatprep.subr.mxu0 %v287_v23  ;;  %v18_v18 = vld [vmem:[%s3254_s0] sm:$0xf]  ;;  %v392_v31 = vld [vmem:[%s3257_s3 + $0x190] sm:$0xff]  ;;  %v602_v53 = vld [vmem:[%s3256_s2 + $0x418] sm:$0xff] }
  0x36   :  { %242 = vmatpush2.msra.mxu1 %v158_v57  ;;  %1917 = vmatpush3.msra.mxu0 %v271_v24  ;;  %371 = vst [vmem:[#allocation2] sm:$0xf] %v18_v18  ;;  %v410_v23 = vld [vmem:[%s3257_s3 + $0x220] sm:$0xff]  ;;  %v376_v34 = vld [vmem:[%s3257_s3 + $0x110] sm:$0xff] }
  0x37   :  { %243 = vmatprep.subr.mxu1 %v157_v58  ;;  %1918 = vmatprep.subr.mxu0 %v286_v25  ;;  %v394_v24 = vld [vmem:[%s3257_s3 + $0x1a0] sm:$0xff]  ;;  %v409_v25 = vld [vmem:[%s3257_s3 + $0x218] sm:$0xff] }
  0x38   :  { %244 = vmatpush2.msra.mxu1 %v156_v59  ;;  %1919 = vmatpush3.msra.mxu0 %v270_v26  ;;  %v378_v26 = vld [vmem:[%s3257_s3 + $0x120] sm:$0xff] }
  0x39   :  { %245 = vmatprep.subr.mxu1 %v155_v60  ;;  %1920 = vmatprep.subr.mxu0 %v285_v27  ;;  %v408_v27 = vld [vmem:[%s3257_s3 + $0x210] sm:$0xff] }
  0x3a   :  { %246 = vmatpush2.msra.mxu1 %v154_v61  ;;  %1921 = vmatpush3.msra.mxu0 %v269_v28  ;;  %v393_v28 = vld [vmem:[%s3257_s3 + $0x198] sm:$0xff] }
  0x3b   :  { %247 = vmatprep.subr.mxu1 %v153_v62  ;;  %1922 = vmatprep.subr.mxu0 %v284_v29  ;;  %v390_v62 = vld [vmem:[%s3257_s3 + $0x180] sm:$0xff]  ;;  %v377_v29 = vld [vmem:[%s3257_s3 + $0x118] sm:$0xff] }
  0x3c   :  { %248 = vmatpush2.msra.mxu1 %v152_v63  ;;  %1923 = vmatpush3.msra.mxu0 %v268_v30  ;;  %v405_v63 = vld [vmem:[%s3257_s3 + $0x1f8] sm:$0xff]  ;;  %v407_v30 = vld [vmem:[%s3257_s3 + $0x208] sm:$0xff] }
  0x3d   :  { %249 = vmatprep.subr.mxu1 %v151_v0  ;;  %1924 = vmatprep.subr.mxu0 %v283_v44  ;;  %v389_v0 = vld [vmem:[%s3257_s3 + $0x178] sm:$0xff] }
  0x3e   :  { %250 = vmatpush2.msra.mxu1 %v150_v1  ;;  %1925 = vmatpush3.msra.mxu0 %v267_v45  ;;  %v404_v1 = vld [vmem:[%s3257_s3 + $0x1f0] sm:$0xff] }
  0x3f   :  { %251 = vmatprep.subr.mxu1 %v149_v2  ;;  %1926 = vmatprep.subr.mxu0 %v282_v46  ;;  %v388_v2 = vld [vmem:[%s3257_s3 + $0x170] sm:$0xff] }
  0x40   :  { %252 = vmatpush2.msra.mxu1 %v148_v3  ;;  %1927 = vmatpush3.msra.mxu0 %v266_v47  ;;  %v403_v3 = vld [vmem:[%s3257_s3 + $0x1e8] sm:$0xff] }
  0x41   :  { %253 = vmatprep.subr.mxu1 %v147_v5  ;;  %1928 = vmatprep.subr.mxu0 %v281_v48  ;;  %v387_v5 = vld [vmem:[%s3257_s3 + $0x168] sm:$0xff] }
  0x42   :  { %254 = vmatpush2.msra.mxu1 %v146_v6  ;;  %1929 = vmatpush3.msra.mxu0 %v265_v49  ;;  %v402_v6 = vld [vmem:[%s3257_s3 + $0x1e0] sm:$0xff] }
  0x43   :  { %2083 = vmatprep.subr.mxu1 %v2208_v4  ;;  %1930 = vmatprep.subr.mxu0 %v280_v50 }
  0x44   :  { %1931 = vmatpush3.msra.mxu0 %v264_v51 }
  0x45   :  { %1935 = vmatprep.subr.mxu0 %v406_v52 }
  0xc6   :  { %v107_v38 = vpop.f32.mrf.mxu0 }
  0xc7   :  { %v108_v39 = vadd.f32 %v107_v38, %v30_v36  ;;  %v391_v36 = vld [vmem:[%s3257_s3 + $0x188] sm:$0xff]  ;;  %v601_v38 = vld [vmem:[%s3256_s2 + $0x410] sm:$0xff] }
  0xc8   :  { %v109_v40 = vpop.f32.mrf.mxu0 }
  0xc9   :  { %v110_v41 = vadd.f32 %v109_v40, %v34_v37  ;;  %v112_v43 = vmax.f32 %v108_v39, 0.0  ;;  %v375_v37 = vld [vmem:[%s3257_s3 + $0x108] sm:$0xff]  ;;  %v1879_v40 = vld [vmem:[%s3257_s3 + $0x100] ss:$0 sm:$0xff] }
  0xcb   :  { %v113_v42 = vmax.f32 %v110_v41, 0.0 }
  0xcd   :  { %255 = vmatprep.mubr.f32.mxu1 %v113_v42  ;;  %v2210_v42 = vmov 1983009808  }
  0xce   :  { %256 = vmatmul.mubr.f32.vlgmr.msra.gmra.mxu1 %v112_v43  ;;  %v419_v43 = vunpack.c.l.s4 %v2210_v42 }
  0xcf   :  { %2091 = vmatprep.mubr.msk.f32.mxu1 %vm2209_vm1, %v2208_v4  ;;  %2084 = vmatpush3.msra.mxu1 %v410_v23  ;;  %v1882_v23 = vld [vmem:[%s3256_s2 + $0x420] ss:$8 sm:$0x7] }
  0xd0   :  { %2085 = vmatprep.subr.mxu1 %v2208_v4  ;;  %v420_v46 = vunpack.c.0.s8 %v419_v43 }
  0xd1   :  { %2086 = vmatpush3.msra.mxu1 %v409_v25 }
  0xd2   :  { %2087 = vmatprep.subr.mxu1 %v2208_v4  ;;  %v2686_v47 = vsub.s32 %v420_v46, %v2519_v32 }
  0xd3   :  { %2088 = vmatpush3.msra.mxu1 %v408_v27 }
  0xd4   :  { %2089 = vmatprep.subr.mxu1 %v2208_v4 }
  0xd5   :  { %2090 = vmatpush3.msra.mxu1 %v407_v30 }
  0xd6   :  { %2094 = vmatprep.subr.mxu1 %v2208_v4 }
 0x18e   :  { %v257_v56 = vpop.f32.mrf.mxu1 }
 0x18f   :  { %v258_v57 = vadd.f32 %v257_v56, %v184_v54  ;;  %v600_v54 = vld [vmem:[%s3256_s2 + $0x408] sm:$0xff]  ;;  %v599_v56 = vld [vmem:[%s3256_s2 + $0x400] sm:$0xff] }
 0x190   :  { %v259_v58 = vpop.f32.mrf.mxu1 }
 0x191   :  { %v260_v59 = vadd.f32 %v259_v58, %v188_v55  ;;  %v262_v61 = vmax.f32 %v258_v57, 0.0  ;;  %v598_v55 = vld [vmem:[%s3256_s2 + $0x3f8] sm:$0xff]  ;;  %v597_v57 = vld [vmem:[%s3256_s2 + $0x3f0] sm:$0xff]  ;;  %v595_v58 = vld [vmem:[%s3256_s2 + $0x3e0] sm:$0xff] }
 0x193   :  { %v263_v60 = vmax.f32 %v260_v59, 0.0  ;;  %v594_v59 = vld [vmem:[%s3256_s2 + $0x3d8] sm:$0xff] }
 0x195   :  { %365 = vmatprep.mubr.f32.mxu0 %v263_v60  ;;  %v596_v60 = vld [vmem:[%s3256_s2 + $0x3e8] sm:$0xff] }
 0x196   :  { %366 = vmatmul.mubr.f32.vlgmr.msra.gmra.mxu0 %v262_v61  ;;  %v592_v61 = vld [vmem:[%s3256_s2 + $0x3c8] sm:$0xff] }
 0x197   :  { %1936 = vmatpush3.msra.mxu0 %v390_v62  ;;  %v591_v62 = vld [vmem:[%s3256_s2 + $0x3c0] sm:$0xff] }
 0x198   :  { %1937 = vmatprep.subr.mxu0 %v405_v63  ;;  %v593_v63 = vld [vmem:[%s3256_s2 + $0x3d0] sm:$0xff] }
 0x199   :  { %1938 = vmatpush3.msra.mxu0 %v389_v0  ;;  %v589_v0 = vld [vmem:[%s3256_s2 + $0x3b0] sm:$0xff] }
 0x19a   :  { %1939 = vmatprep.subr.mxu0 %v404_v1  ;;  %v588_v1 = vld [vmem:[%s3256_s2 + $0x3a8] sm:$0xff] }
 0x19b   :  { %1940 = vmatpush3.msra.mxu0 %v388_v2  ;;  %v590_v2 = vld [vmem:[%s3256_s2 + $0x3b8] sm:$0xff] }
 0x19c   :  { %1941 = vmatprep.subr.mxu0 %v403_v3  ;;  %v586_v3 = vld [vmem:[%s3256_s2 + $0x398] sm:$0xff] }
 0x19d   :  { %1942 = vmatpush3.msra.mxu0 %v387_v5  ;;  %v585_v5 = vld [vmem:[%s3256_s2 + $0x390] sm:$0xff] }
 0x19e   :  { %1943 = vmatprep.subr.mxu0 %v402_v6  ;;  %v587_v6 = vld [vmem:[%s3256_s2 + $0x3a0] sm:$0xff] }
 0x19f   :  { %1944 = vmatpush3.msra.mxu0 %v386_v7  ;;  %v583_v7 = vld [vmem:[%s3256_s2 + $0x380] sm:$0xff] }
 0x1a0   :  { %1945 = vmatprep.subr.mxu0 %v401_v8  ;;  %v582_v8 = vld [vmem:[%s3256_s2 + $0x378] sm:$0xff] }
 0x1a1   :  { %1946 = vmatpush3.msra.mxu0 %v385_v9  ;;  %v584_v9 = vld [vmem:[%s3256_s2 + $0x388] sm:$0xff] }
 0x1a2   :  { %1947 = vmatprep.subr.mxu0 %v400_v10  ;;  %v580_v10 = vld [vmem:[%s3256_s2 + $0x368] sm:$0xff] }
 0x1a3   :  { %1948 = vmatpush3.msra.mxu0 %v384_v11  ;;  %v579_v11 = vld [vmem:[%s3256_s2 + $0x360] sm:$0xff] }
 0x1a4   :  { %1949 = vmatprep.subr.mxu0 %v399_v12  ;;  %v581_v12 = vld [vmem:[%s3256_s2 + $0x370] sm:$0xff] }
 0x1a5   :  { %1950 = vmatpush3.msra.mxu0 %v383_v13 }
 0x1a6   :  { %1951 = vmatprep.subr.mxu0 %v398_v14 }
 0x1a7   :  { %1952 = vmatpush3.msra.mxu0 %v382_v15 }
 0x1a8   :  { %1953 = vmatprep.subr.mxu0 %v397_v16  ;;  %v1880_v16 = vld [vmem:[%s3257_s3 + $0x228] ss:$0 sm:$0xff] }
 0x1a9   :  { %1954 = vmatpush3.msra.mxu0 %v381_v17 }
 0x1aa   :  { %1955 = vmatprep.subr.mxu0 %v396_v19 }
 0x1ab   :  { %1956 = vmatpush3.msra.mxu0 %v380_v20 }
 0x1ac   :  { %1957 = vmatprep.subr.mxu0 %v395_v21 }
 0x1ad   :  { %1958 = vmatpush3.msra.mxu0 %v379_v22  ;;  %v2784_v22 = vsub.s32 2, %v2519_v32 }
 0x1ae   :  { %1959 = vmatprep.subr.mxu0 %v394_v24  ;;  %v609_v24 = vrot.slane %v1882_v23, %v2522_v33 }
 0x1af   :  { %1960 = vmatpush3.msra.mxu0 %v378_v26  ;;  %v617_v25 = vrot.slane %v1882_v23, %v2784_v22  ;;  %v613_v26 = vrot.slane %v1882_v23, %v2528_v35  ;;  %v942_v23 = vld [vmem:[%s3257_s3 + $0x260] sm:$0xff] }
 0x1b0   :  { %1961 = vmatprep.subr.mxu0 %v393_v28 }
 0x1b1   :  { %1962 = vmatpush3.msra.mxu0 %v377_v29 }
 0x1b2   :  { %1963 = vmatprep.subr.mxu0 %v392_v31 }
 0x1b3   :  { %1964 = vmatpush3.msra.mxu0 %v376_v34 }
 0x1b4   :  { %1965 = vmatprep.subr.mxu0 %v391_v36 }
 0x1b5   :  { %1966 = vmatpush3.msra.mxu0 %v375_v37 }
 0x1b6   :  { %641 = vmatprep.subr.mxu0 %v601_v38 }
 0x256   :  { %v1932_v39 = vpop.f32.mrf.mxu0 }
 0x258   :  { %v1933_v41 = vpop.f32.mrf.mxu0 }
 0x259   :  { %v1934_v44 = vadd.f32 %v1933_v41, %v1932_v39 }
 0x25b   :  { %v368_v45 = vadd.f32 %v1934_v44, %v1879_v40 }
 0x25d   :  { %373 = vst.msk [vmem:[#allocation2 + $0x4] sm:$0x3] %vm372_vm2, %v368_v45 }
 0x264   :  { %v2688_v48 = vld [vmem:[#allocation2] sm:$0x3f] }
 0x265   :  { %v417_v49 = vcombine.high %v2688_v48, %v2688_v48  ;;  %v424_v50 = vrot.slane %v2688_v48, %v2686_v47 }
 0x267   :  { %v432_v51 = vcombine.high %v424_v50, %v424_v50  ;;  %v431_v52 = vrot.slane %v417_v49, %v2686_v47 }
 0x269   :  { %502 = vmatprep.mubr.f32.mxu0 %v432_v51  ;;  %2092 = vmatmul.mubr.msk.f32.vlgmr.msra.gmra.mxu1 %vm435_vm3, %v431_v52 }
 0x26a   :  { %503 = vmatmul.mubr.f32.vlgmr.msra.gmra.mxu0 %v424_v50  ;;  %2095 = vmatpush3.msra.mxu1 %v602_v53 }
 0x26b   :  { %642 = vmatpush1.msra.mxu0 %v600_v54  ;;  %2096 = vmatprep.subr.mxu1 %v2208_v4 }
 0x26c   :  { %643 = vmatprep.subr.mxu0 %v598_v55  ;;  %2097 = vmatpush3.msra.mxu1 %v599_v56 }
 0x26d   :  { %644 = vmatpush1.msra.mxu0 %v597_v57  ;;  %2098 = vmatprep.subr.mxu1 %v2208_v4 }
 0x26e   :  { %689 = vmatprep.mubr.f32.mxu0 %v2208_v4  ;;  %2110 = vmatprep.mubr.msk.f32.mxu1 %vm2209_vm1, %v2208_v4 }
 0x26f   :  { %645 = vmatprep.subr.mxu0 %v595_v58  ;;  %2099 = vmatpush3.msra.mxu1 %v596_v60 }
 0x270   :  { %646 = vmatpush1.msra.mxu0 %v594_v59  ;;  %2100 = vmatprep.subr.mxu1 %v2208_v4 }
 0x271   :  { %647 = vmatprep.subr.mxu0 %v592_v61  ;;  %2101 = vmatpush3.msra.mxu1 %v593_v63  ;;  %v951_v63 = vld [vmem:[%s3257_s3 + $0x2a8] sm:$0xff] }
 0x272   :  { %648 = vmatpush1.msra.mxu0 %v591_v62  ;;  %2102 = vmatprep.subr.mxu1 %v2208_v4  ;;  %v967_v62 = vld [vmem:[%s3257_s3 + $0x328] sm:$0xff] }
 0x273   :  { %649 = vmatprep.subr.mxu0 %v589_v0  ;;  %2103 = vmatpush3.msra.mxu1 %v590_v2  ;;  %v966_v0 = vld [vmem:[%s3257_s3 + $0x320] sm:$0xff]  ;;  %v965_v2 = vld [vmem:[%s3257_s3 + $0x318] sm:$0xff] }
 0x274   :  { %650 = vmatpush1.msra.mxu0 %v588_v1  ;;  %2104 = vmatprep.subr.mxu1 %v2208_v4  ;;  %v950_v1 = vld [vmem:[%s3257_s3 + $0x2a0] sm:$0xff] }
 0x275   :  { %651 = vmatprep.subr.mxu0 %v586_v3  ;;  %2105 = vmatpush3.msra.mxu1 %v587_v6  ;;  %v949_v3 = vld [vmem:[%s3257_s3 + $0x298] sm:$0xff]  ;;  %v948_v6 = vld [vmem:[%s3257_s3 + $0x290] sm:$0xff] }
 0x276   :  { %652 = vmatpush1.msra.mxu0 %v585_v5  ;;  %2106 = vmatprep.subr.mxu1 %v2208_v4  ;;  %v964_v5 = vld [vmem:[%s3257_s3 + $0x310] sm:$0xff] }
 0x277   :  { %653 = vmatprep.subr.mxu0 %v583_v7  ;;  %2107 = vmatpush3.msra.mxu1 %v584_v9  ;;  %v963_v7 = vld [vmem:[%s3257_s3 + $0x308] sm:$0xff]  ;;  %v962_v9 = vld [vmem:[%s3257_s3 + $0x300] sm:$0xff] }
 0x278   :  { %654 = vmatpush1.msra.mxu0 %v582_v8  ;;  %2108 = vmatprep.subr.mxu1 %v2208_v4  ;;  %v947_v8 = vld [vmem:[%s3257_s3 + $0x288] sm:$0xff] }
 0x279   :  { %655 = vmatprep.subr.mxu0 %v580_v10  ;;  %2109 = vmatpush3.msra.mxu1 %v581_v12  ;;  %v946_v10 = vld [vmem:[%s3257_s3 + $0x280] sm:$0xff]  ;;  %v945_v12 = vld [vmem:[%s3257_s3 + $0x278] sm:$0xff] }
 0x27a   :  { %656 = vmatpush1.msra.mxu0 %v579_v11  ;;  %2113 = vmatprep.subr.mxu1 %v2208_v4  ;;  %v961_v11 = vld [vmem:[%s3257_s3 + $0x2f8] sm:$0xff] }
 0x27b   :  { %1984 = vmatprep.subr.mxu0 %v967_v62 }
 0x329   :  { %v574_v13 = vpop.f32.mrf.mxu1 }
 0x32a   :  { %v1967_v14 = vpop.f32.mrf.mxu0 }
 0x32b   :  { %v2093_v15 = vpop.f32.mrf.mxu1 }
 0x32c   :  { %v1968_v17 = vpop.f32.mrf.mxu0  ;;  %v970_v15 = vld [vmem:[%s3257_s3 + $0x340] sm:$0xff] }
 0x32d   :  { %v1969_v18 = vadd.f32 %v1968_v17, %v1967_v14  ;;  %v960_v14 = vld [vmem:[%s3257_s3 + $0x2f0] sm:$0xff]  ;;  %v969_v17 = vld [vmem:[%s3257_s3 + $0x338] sm:$0xff] }
 0x32f   :  { %v505_v19 = vadd.f32 %v1969_v18, %v1880_v16  ;;  %v944_v16 = vld [vmem:[%s3257_s3 + $0x270] sm:$0xff]  ;;  %v959_v18 = vld [vmem:[%s3257_s3 + $0x2e8] sm:$0xff] }
 0x331   :  { %v575_v20 = vadd.f32 %v574_v13, %v505_v19  ;;  %v971_v13 = vld [vmem:[%s3257_s3 + $0x348] sm:$0xff] }
 0x332   :  { %v943_v19 = vld [vmem:[%s3257_s3 + $0x268] sm:$0xff] }
 0x333   :  { %v578_v21 = vmax.f32 %v575_v20, 0.0  ;;  %v968_v20 = vld [vmem:[%s3257_s3 + $0x330] sm:$0xff] }
 0x335   :  { %1883 = vmatmul.mubr.msk.f32.vlgmr.msra.gmra.mxu0 %vm621_vm4, %v578_v21  ;;  %2111 = vmatmul.mubr.msk.f32.vlgmr.msra.gmra.mxu1 %vm621_vm4, %v578_v21  ;;  %v958_v21 = vld [vmem:[%s3257_s3 + $0x2e0] sm:$0xff] }
 0x336   :  { %2121 = vmatprep.mubr.msk.f32.mxu1 %vm2209_vm1, %v2208_v4  ;;  %1985 = vmatpush3.msra.mxu0 %v951_v63 }
 0x337   :  { %1986 = vmatprep.subr.mxu0 %v966_v0  ;;  %2114 = vmatpush3.msra.mxu1 %v971_v13 }
 0x338   :  { %1987 = vmatpush3.msra.mxu0 %v950_v1  ;;  %2115 = vmatprep.subr.mxu1 %v2208_v4 }
 0x339   :  { %1988 = vmatprep.subr.mxu0 %v965_v2  ;;  %2116 = vmatpush3.msra.mxu1 %v970_v15 }
 0x33a   :  { %1989 = vmatpush3.msra.mxu0 %v949_v3  ;;  %2117 = vmatprep.subr.mxu1 %v2208_v4 }
 0x33b   :  { %1990 = vmatprep.subr.mxu0 %v964_v5  ;;  %2118 = vmatpush3.msra.mxu1 %v969_v17  ;;  %v1157_v17 = vld [vmem:[%s3256_s2 + $0x4f8] sm:$0xff] }
 0x33c   :  { %1991 = vmatpush3.msra.mxu0 %v948_v6  ;;  %2119 = vmatprep.subr.mxu1 %v2208_v4 }
 0x33d   :  { %1992 = vmatprep.subr.mxu0 %v963_v7  ;;  %2120 = vmatpush3.msra.mxu1 %v968_v20  ;;  %v1152_v20 = vld [vmem:[%s3256_s2 + $0x4d0] sm:$0xff] }
 0x33e   :  { %1993 = vmatpush3.msra.mxu0 %v947_v8 }
 0x33f   :  { %1994 = vmatprep.subr.mxu0 %v962_v9 }
 0x340   :  { %1995 = vmatpush3.msra.mxu0 %v946_v10 }
 0x341   :  { %1996 = vmatprep.subr.mxu0 %v961_v11 }
 0x342   :  { %1997 = vmatpush3.msra.mxu0 %v945_v12 }
 0x343   :  { %1998 = vmatprep.subr.mxu0 %v960_v14 }
 0x344   :  { %1999 = vmatpush3.msra.mxu0 %v944_v16  ;;  %v1158_v16 = vld [vmem:[%s3256_s2 + $0x500] sm:$0xff] }
 0x345   :  { %2000 = vmatprep.subr.mxu0 %v959_v18  ;;  %v1155_v18 = vld [vmem:[%s3256_s2 + $0x4e8] sm:$0xff] }
 0x346   :  { %2001 = vmatpush3.msra.mxu0 %v943_v19  ;;  %v1154_v19 = vld [vmem:[%s3256_s2 + $0x4e0] sm:$0xff] }
 0x347   :  { %2002 = vmatprep.subr.mxu0 %v958_v21  ;;  %v1151_v21 = vld [vmem:[%s3256_s2 + $0x4c8] sm:$0xff] }
 0x348   :  { %2003 = vmatpush3.msra.mxu0 %v942_v23  ;;  %v1149_v23 = vld [vmem:[%s3256_s2 + $0x4b8] sm:$0xff] }
 0x3f5   :  { %v691_v27 = vpop.f32.mrf.mxu0  ;;  %v762_v28 = vpop.f32.mrf.mxu1 }
 0x3f6   :  { %v692_v31 = vadd.f32 %v691_v27, %v609_v24  ;;  %v763_v34 = vadd.f32 %v762_v28, %v617_v25  ;;  %v957_v24 = vld [vmem:[%s3257_s3 + $0x2d8] sm:$0xff]  ;;  %v940_v27 = vld [vmem:[%s3257_s3 + $0x250] sm:$0xff]  ;;  %v955_v28 = vld [vmem:[%s3257_s3 + $0x2c8] sm:$0xff] }
 0x3f7   :  { %v693_v29 = vpop.f32.mrf.mxu0  ;;  %v2112_v30 = vpop.f32.mrf.mxu1  ;;  %v941_v25 = vld [vmem:[%s3257_s3 + $0x258] sm:$0xff]  ;;  %2004 = vmatprep.subr.mxu0 %v957_v24  ;;  %v1148_v24 = vld [vmem:[%s3256_s2 + $0x4b0] sm:$0xff] }
 0x3f8   :  { %v694_v36 = vadd.f32 %v693_v29, %v613_v26  ;;  %v783_v38 = vrot.slane %v763_v34, %v2686_v47  ;;  %v956_v26 = vld [vmem:[%s3257_s3 + $0x2d0] sm:$0xff]  ;;  %2005 = vmatpush3.msra.mxu0 %v941_v25  ;;  %v939_v29 = vld [vmem:[%s3257_s3 + $0x248] sm:$0xff]  ;;  %v954_v30 = vld [vmem:[%s3257_s3 + $0x2c0] sm:$0xff] }
 0x3f9   :  { %2006 = vmatprep.subr.mxu0 %v956_v26  ;;  %v953_v34 = vld [vmem:[%s3257_s3 + $0x2b8] sm:$0xff]  ;;  %v1146_v25 = vld [vmem:[%s3256_s2 + $0x4a0] sm:$0xff] }
 0x3fa   :  { %v769_v37 = vcombine.low %v692_v31, %v694_v36  ;;  %2007 = vmatpush3.msra.mxu0 %v940_v27  ;;  %v938_v31 = vld [vmem:[%s3257_s3 + $0x240] sm:$0xff]  ;;  %v937_v36 = vld [vmem:[%s3257_s3 + $0x238] sm:$0xff]  ;;  %v1143_v27 = vld [vmem:[%s3256_s2 + $0x488] sm:$0xff] }
 0x3fb   :  { %2008 = vmatprep.subr.mxu0 %v955_v28  ;;  %v1145_v26 = vld [vmem:[%s3256_s2 + $0x498] sm:$0xff]  ;;  %v1142_v28 = vld [vmem:[%s3256_s2 + $0x480] sm:$0xff] }
 0x3fc   :  { %v776_v39 = vrot.slane %v769_v37, %v2686_v47  ;;  %2009 = vmatpush3.msra.mxu0 %v939_v29  ;;  %v952_v37 = vld [vmem:[%s3257_s3 + $0x2b0] sm:$0xff] }
 0x3fd   :  { %2010 = vmatprep.subr.mxu0 %v954_v30  ;;  %v1140_v29 = vld [vmem:[%s3256_s2 + $0x470] sm:$0xff]  ;;  %v1139_v30 = vld [vmem:[%s3256_s2 + $0x468] sm:$0xff] }
 0x3fe   :  { %v784_v40 = vcombine.low %v776_v39, %v783_v38  ;;  %2011 = vmatpush3.msra.mxu0 %v938_v31  ;;  %v936_v38 = vld [vmem:[%s3257_s3 + $0x230] sm:$0xff]  ;;  %v1161_v39 = vld [vmem:[%s3256_s2 + $0x518] sm:$0xff] }
 0x3ff   :  { %2012 = vmatprep.subr.mxu0 %v953_v34  ;;  %1200 = vmatprep.subr.mxu1 %v1161_v39 }
 0x400   :  { %v2795_v41 = vadd.f32 %v784_v40, %v2688_v48  ;;  %2013 = vmatpush3.msra.mxu0 %v937_v36 }
 0x401   :  { %2014 = vmatprep.subr.mxu0 %v952_v37  ;;  %v1887_v37 = vld [vmem:[%s3257_s3 + $0x350] ss:$0 sm:$0xff] }
 0x402   :  { %v788_v42 = vcombine.high %v2795_v41, %v2795_v41  ;;  %v795_v43 = vrot.slane %v2795_v41, %v2686_v47  ;;  %v817_v44 = vmul.f32 %v2795_v41, %v2795_v41  ;;  %2015 = vmatpush3.msra.mxu0 %v936_v38 }
 0x404   :  { %v802_v45 = vrot.slane %v788_v42, %v2686_v47  ;;  %v803_v46 = vcombine.high %v795_v43, %v795_v43  ;;  %v819_v49 = vcombine.high %v817_v44, %v817_v44  ;;  %v826_v50 = vrot.slane %v817_v44, %v2686_v47 }
 0x405   :  { %v808_v51 = vsel %vm807_vm5, %v795_v43, 0.0 }
 0x406   :  { %v809_v48 = vsel %vm807_vm5, %v803_v46, 0.0  ;;  %v834_v53 = vcombine.high %v826_v50, %v826_v50  ;;  %v811_v54 = vsel %vm372_vm2, %v802_v45, 0.0  ;;  %v833_v55 = vrot.slane %v819_v49, %v2686_v47 }
 0x407   :  { %v810_v52 = vadd.f32 %v809_v48, %v808_v51  ;;  %v838_v57 = vsel %vm807_vm5, %v826_v50, 0.0  ;;  %v2211_v49 = vmov 269488144   ;;  %v1885_v48 = vld [vmem:[%s3256_s2 + $0x438] ss:$8 sm:$0x7] }
 0x408   :  { %v839_v58 = vsel %vm807_vm5, %v834_v53, 0.0  ;;  %v841_v60 = vsel %vm372_vm2, %v833_v55, 0.0  ;;  %v850_v50 = vunpack.c.l.s4 %v2211_v49  ;;  %v880_v55 = vrot.slane %v1885_v48, %v2528_v35  ;;  %v1153_v49 = vld [vmem:[%s3256_s2 + $0x4d8] sm:$0xff] }
 0x409   :  { %v812_v56 = vadd.f32 %v811_v54, %v810_v52  ;;  %v840_v59 = vadd.f32 %v839_v58, %v838_v57  ;;  %v1886_v52 = vld [vmem:[%s3256_s2 + $0x450] ss:$8 sm:$0x7]  ;;  %v876_v54 = vrot.slane %v1885_v48, %v2522_v33 }
 0x40a   :  { %v851_v53 = vunpack.c.0.s8 %v850_v50  ;;  %v913_v57 = vrot.slane %v1886_v52, %v2528_v35  ;;  %v1150_v50 = vld [vmem:[%s3256_s2 + $0x4c0] sm:$0xff] }
 0x40b   :  { %813 = vadd.xlane.f32.xlu0 %v812_v56  ;;  %v842_v61 = vadd.f32 %v841_v60, %v840_v59  ;;  %v909_v56 = vrot.slane %v1886_v52, %v2522_v33  ;;  %v884_v59 = vrot.slane %v1885_v48, %v2784_v22  ;;  %v885_v60 = vcombine.low %v876_v54, %v880_v55  ;;  %v1144_v48 = vld [vmem:[%s3256_s2 + $0x490] sm:$0xff] }
 0x40c   :  { %v2937_v58 = vsub.s32 %v851_v53, %v2519_v32  ;;  %v1889_v54 = vld [vmem:[%s3256_s2 + $0x528] ss:$8 sm:$0x7] }
 0x40d   :  { %v918_v62 = vcombine.low %v909_v56, %v913_v57  ;;  %v892_v0 = vrot.slane %v885_v60, %v2686_v47  ;;  %v899_v1 = vrot.slane %v884_v59, %v2686_v47  ;;  %v1173_v55 = vrot.slane %v1889_v54, %v2528_v35 }
 0x40e   :  { %v1169_v57 = vrot.slane %v1889_v54, %v2522_v33 }
 0x40f   :  { %843 = vadd.xlane.f32.xlu0 %v842_v61  ;;  %v917_v61 = vrot.slane %v1886_v52, %v2784_v22  ;;  %v925_v2 = vrot.slane %v918_v62, %v2686_v47  ;;  %v900_v7 = vcombine.low %v892_v0, %v899_v1  ;;  %v1141_v52 = vld [vmem:[%s3256_s2 + $0x478] sm:$0xff] }
 0x411   :  { %v932_v3 = vrot.slane %v917_v61, %v2686_v47  ;;  %v1177_v61 = vrot.slane %v1889_v54, %v2784_v22  ;;  %v1514_v54 = vld [vmem:[%s3257_s3 + $0x400] sm:$0xff] }
 0x413   :  { %v933_v9 = vcombine.low %v925_v2, %v932_v3 }
 0x494   :  { %v814_v40 = vpop.xlane.xlu0 %813 }
 0x495   :  { %v816_v42 = vmul.f32 0.0034722222, %v814_v40 }
 0x497   :  { %v846_v44 = vmul.f32 %v816_v42, %v816_v42  ;;  %v855_v63 = vrot.slane %v816_v42, %v2937_v58 }
 0x498   :  { %v844_v43 = vpop.xlane.xlu0 %843 }
 0x499   :  { %v845_v45 = vmul.f32 0.0034722222, %v844_v43  ;;  %v857_v32 = vsub.f32 %v2795_v41, %v855_v63  ;;  %v1160_v41 = vld [vmem:[%s3256_s2 + $0x510] sm:$0xff] }
 0x49b   :  { %v847_v46 = vsub.f32 %v845_v45, %v846_v44  ;;  %v1162_v44 = vld [vmem:[%s3256_s2 + $0x520] sm:$0xff]  ;;  %v1159_v45 = vld [vmem:[%s3256_s2 + $0x508] sm:$0xff] }
 0x49d   :  { %v858_v51 = vadd.f32 1e-05, %v847_v46  ;;  %v1156_v46 = vld [vmem:[%s3256_s2 + $0x4f0] sm:$0xff] }
 0x49f   :  { %2182 = vrsqrt.f32 %v858_v51  ;;  %v1147_v51 = vld [vmem:[%s3256_s2 + $0x4a8] sm:$0xff] }
 0x4ac   :  { %v2183_v5 = vpop.eup %2182 }
 0x4ad   :  { %v867_v6 = vrot.slane %v2183_v5, %v2937_v58 }
 0x4af   :  { %v869_v8 = vmul.f32 %v867_v6, %v857_v32 }
 0x4b1   :  { %v902_v10 = vmul.f32 %v900_v7, %v869_v8 }
 0x4b3   :  { %v2948_v11 = vadd.f32 %v933_v9, %v902_v10 }
 0x4b5   :  { %v985_v12 = vrot.slane %v2948_v11, %v2686_v47  ;;  %v978_v13 = vcombine.high %v2948_v11, %v2948_v11 }
 0x4b7   :  { %v993_v14 = vcombine.high %v985_v12, %v985_v12  ;;  %v992_v15 = vrot.slane %v978_v13, %v2686_v47 }
 0x4b9   :  { %1062 = vmatprep.mubr.f32.mxu0 %v993_v14  ;;  %2122 = vmatmul.mubr.msk.f32.vlgmr.msra.gmra.mxu1 %vm435_vm3, %v992_v15 }
 0x4ba   :  { %1063 = vmatmul.mubr.f32.vlgmr.msra.gmra.mxu0 %v985_v12  ;;  %1201 = vmatpush1.msra.mxu1 %v1160_v41 }
 0x4bb   :  { %1202 = vmatprep.subr.mxu1 %v1158_v16  ;;  %1248 = vmatprep.mubr.f32.mxu1 %v2208_v4 }
 0x4bc   :  { %1203 = vmatpush1.msra.mxu1 %v1157_v17 }
 0x4bd   :  { %1204 = vmatprep.subr.mxu1 %v1155_v18 }
 0x4be   :  { %1205 = vmatpush1.msra.mxu1 %v1154_v19 }
 0x4bf   :  { %1206 = vmatprep.subr.mxu1 %v1152_v20 }
 0x4c0   :  { %1207 = vmatpush1.msra.mxu1 %v1151_v21 }
 0x4c1   :  { %1208 = vmatprep.subr.mxu1 %v1149_v23 }
 0x4c2   :  { %1209 = vmatpush1.msra.mxu1 %v1148_v24 }
 0x4c3   :  { %1210 = vmatprep.subr.mxu1 %v1146_v25  ;;  %v1524_v25 = vld [vmem:[%s3257_s3 + $0x450] sm:$0xff] }
 0x4c4   :  { %1211 = vmatpush1.msra.mxu1 %v1145_v26  ;;  %2033 = vmatprep.subr.mxu0 %v1524_v25  ;;  %v1508_v26 = vld [vmem:[%s3257_s3 + $0x3d0] sm:$0xff] }
 0x4c5   :  { %1212 = vmatprep.subr.mxu1 %v1143_v27  ;;  %2034 = vmatpush3.msra.mxu0 %v1508_v26  ;;  %v1523_v27 = vld [vmem:[%s3257_s3 + $0x448] sm:$0xff] }
 0x4c6   :  { %1213 = vmatpush1.msra.mxu1 %v1142_v28  ;;  %2035 = vmatprep.subr.mxu0 %v1523_v27  ;;  %v1507_v28 = vld [vmem:[%s3257_s3 + $0x3c8] sm:$0xff] }
 0x4c7   :  { %1214 = vmatprep.subr.mxu1 %v1140_v29  ;;  %2036 = vmatpush3.msra.mxu0 %v1507_v28  ;;  %v1522_v29 = vld [vmem:[%s3257_s3 + $0x440] sm:$0xff] }
 0x4c8   :  { %1215 = vmatpush1.msra.mxu1 %v1139_v30  ;;  %2037 = vmatprep.subr.mxu0 %v1522_v29  ;;  %v1506_v30 = vld [vmem:[%s3257_s3 + $0x3c0] sm:$0xff] }
 0x4c9   :  { %2124 = vmatprep.subr.mxu1 %v2208_v4  ;;  %2038 = vmatpush3.msra.mxu0 %v1506_v30 }
 0x579   :  { %v1134_v31 = vpop.f32.mrf.mxu1 }
 0x57a   :  { %v2016_v34 = vpop.f32.mrf.mxu0 }
 0x57b   :  { %v2123_v36 = vpop.f32.mrf.mxu1 }
 0x57c   :  { %v2017_v38 = vpop.f32.mrf.mxu0  ;;  %v1520_v36 = vld [vmem:[%s3257_s3 + $0x430] sm:$0xff] }
 0x57d   :  { %v2018_v39 = vadd.f32 %v2017_v38, %v2016_v34  ;;  %v1505_v34 = vld [vmem:[%s3257_s3 + $0x3b8] sm:$0xff]  ;;  %v1519_v38 = vld [vmem:[%s3257_s3 + $0x428] sm:$0xff] }
 0x57f   :  { %v1065_v40 = vadd.f32 %v2018_v39, %v1887_v37  ;;  %v1504_v37 = vld [vmem:[%s3257_s3 + $0x3b0] sm:$0xff]  ;;  %v1503_v39 = vld [vmem:[%s3257_s3 + $0x3a8] sm:$0xff] }
 0x581   :  { %v1135_v42 = vadd.f32 %v1134_v31, %v1065_v40  ;;  %v1521_v31 = vld [vmem:[%s3257_s3 + $0x438] sm:$0xff]  ;;  %v1518_v40 = vld [vmem:[%s3257_s3 + $0x420] sm:$0xff] }
 0x582   :  { %2039 = vmatprep.subr.mxu0 %v1521_v31 }
 0x583   :  { %v1138_v43 = vmax.f32 %v1135_v42, 0.0  ;;  %2040 = vmatpush3.msra.mxu0 %v1505_v34  ;;  %v1502_v42 = vld [vmem:[%s3257_s3 + $0x3a0] sm:$0xff] }
 0x584   :  { %2041 = vmatprep.subr.mxu0 %v1520_v36 }
 0x585   :  { %1890 = vmatmul.mubr.msk.f32.vlgmr.msra.gmra.mxu1 %vm621_vm4, %v1138_v43  ;;  %2042 = vmatpush3.msra.mxu0 %v1504_v37 }
 0x586   :  { %2125 = vmatpush3.msra.mxu1 %v1162_v44  ;;  %2140 = vmatprep.mubr.msk.f32.mxu1 %vm2209_vm1, %v2208_v4  ;;  %v1517_v44 = vld [vmem:[%s3257_s3 + $0x418] sm:$0xff] }
 0x587   :  { %2126 = vmatprep.subr.mxu1 %v2208_v4  ;;  %2043 = vmatprep.subr.mxu0 %v1519_v38  ;;  %v1696_v38 = vld [vmem:[%s3257_s3 + $0x480] sm:$0xff] }
 0x588   :  { %2127 = vmatpush3.msra.mxu1 %v1159_v45  ;;  %2044 = vmatpush3.msra.mxu0 %v1503_v39  ;;  %v1527_v45 = vld [vmem:[%s3257_s3 + $0x468] sm:$0xff] }
 0x589   :  { %2128 = vmatprep.subr.mxu1 %v2208_v4  ;;  %2045 = vmatprep.subr.mxu0 %v1518_v40 }
 0x58a   :  { %2129 = vmatpush3.msra.mxu1 %v1156_v46  ;;  %v1501_v46 = vld [vmem:[%s3257_s3 + $0x398] sm:$0xff]  ;;  %2046 = vmatpush3.msra.mxu0 %v1502_v42 }
 0x58b   :  { %2130 = vmatprep.subr.mxu1 %v2208_v4  ;;  %2047 = vmatprep.subr.mxu0 %v1517_v44 }
 0x58c   :  { %2131 = vmatpush3.msra.mxu1 %v1153_v49  ;;  %v1526_v49 = vld [vmem:[%s3257_s3 + $0x460] sm:$0xff]  ;;  %2048 = vmatpush3.msra.mxu0 %v1501_v46 }
 0x58d   :  { %2132 = vmatprep.subr.mxu1 %v2208_v4 }
 0x58e   :  { %2133 = vmatpush3.msra.mxu1 %v1150_v50  ;;  %v1516_v50 = vld [vmem:[%s3257_s3 + $0x410] sm:$0xff] }
 0x58f   :  { %2134 = vmatprep.subr.mxu1 %v2208_v4  ;;  %2049 = vmatprep.subr.mxu0 %v1516_v50 }
 0x590   :  { %2135 = vmatpush3.msra.mxu1 %v1147_v51  ;;  %v1500_v51 = vld [vmem:[%s3257_s3 + $0x390] sm:$0xff] }
 0x591   :  { %2136 = vmatprep.subr.mxu1 %v2208_v4  ;;  %2050 = vmatpush3.msra.mxu0 %v1500_v51  ;;  %v1782_v51 = vld [vmem:[%s3257_s3 + $0x4c0] sm:$0xff] }
 0x592   :  { %2137 = vmatpush3.msra.mxu1 %v1144_v48  ;;  %v1525_v48 = vld [vmem:[%s3257_s3 + $0x458] sm:$0xff] }
 0x593   :  { %2138 = vmatprep.subr.mxu1 %v2208_v4 }
 0x594   :  { %2139 = vmatpush3.msra.mxu1 %v1141_v52  ;;  %v1515_v52 = vld [vmem:[%s3257_s3 + $0x408] sm:$0xff] }
 0x595   :  { %2141 = vmatmul.mubr.msk.f32.vlgmr.msra.gmra.mxu1 %vm621_vm4, %v1138_v43  ;;  %2143 = vmatprep.subr.mxu1 %v2208_v4  ;;  %v1528_v43 = vld [vmem:[%s3257_s3 + $0x470] sm:$0xff] }
 0x596   :  { %2151 = vmatprep.mubr.msk.f32.mxu1 %vm2209_vm1, %v2208_v4  ;;  %2144 = vmatpush3.msra.mxu1 %v1528_v43  ;;  %v1894_v43 = vld [vmem:[%s3257_s3 + $0x478] ss:$0 sm:$0xff] }
 0x597   :  { %2145 = vmatprep.subr.mxu1 %v2208_v4  ;;  %2051 = vmatprep.subr.mxu0 %v1515_v52  ;;  %v1780_v52 = vld [vmem:[%s3257_s3 + $0x4b0] sm:$0xff] }
 0x598   :  { %2146 = vmatpush3.msra.mxu1 %v1527_v45 }
 0x599   :  { %2147 = vmatprep.subr.mxu1 %v2208_v4 }
 0x59a   :  { %2148 = vmatpush3.msra.mxu1 %v1526_v49 }
 0x59b   :  { %2149 = vmatprep.subr.mxu1 %v2208_v4 }
 0x59c   :  { %2150 = vmatpush3.msra.mxu1 %v1525_v48  ;;  %v1781_v48 = vld [vmem:[%s3257_s3 + $0x4b8] sm:$0xff] }
 0x59d   :  { %2154 = vmatprep.subr.mxu1 %v2208_v4 }
 0x645   :  { %v1250_v53 = vpop.f32.mrf.mxu1 }
 0x646   :  { %v1251_v60 = vadd.f32 %v1250_v53, %v1169_v57  ;;  %v1499_v53 = vld [vmem:[%s3257_s3 + $0x388] sm:$0xff]  ;;  %v1497_v57 = vld [vmem:[%s3257_s3 + $0x378] sm:$0xff] }
 0x647   :  { %v1252_v56 = vpop.f32.mrf.mxu1  ;;  %2052 = vmatpush3.msra.mxu0 %v1499_v53  ;;  %v1779_v53 = vld [vmem:[%s3257_s3 + $0x4a8] sm:$0xff] }
 0x648   :  { %v1253_v59 = vadd.f32 %v1252_v56, %v1173_v55  ;;  %v1498_v55 = vld [vmem:[%s3257_s3 + $0x380] sm:$0xff]  ;;  %v1513_v56 = vld [vmem:[%s3257_s3 + $0x3f8] sm:$0xff]  ;;  %2053 = vmatprep.subr.mxu0 %v1514_v54 }
 0x649   :  { %2054 = vmatpush3.msra.mxu0 %v1498_v55  ;;  %v1896_v54 = vld [vmem:[%s3257_s3 + $0x4a0] ss:$0 sm:$0xff] }
 0x64a   :  { %v1328_v62 = vcombine.low %v1251_v60, %v1253_v59  ;;  %v1512_v59 = vld [vmem:[%s3257_s3 + $0x3f0] sm:$0xff]  ;;  %2055 = vmatprep.subr.mxu0 %v1513_v56 }
 0x64b   :  { %v1496_v60 = vld [vmem:[%s3257_s3 + $0x370] sm:$0xff]  ;;  %2056 = vmatpush3.msra.mxu0 %v1497_v57 }
 0x64c   :  { %v1335_v2 = vrot.slane %v1328_v62, %v2686_v47  ;;  %2057 = vmatprep.subr.mxu0 %v1512_v59  ;;  %v1495_v62 = vld [vmem:[%s3257_s3 + $0x368] sm:$0xff] }
 0x64d   :  { %2058 = vmatpush3.msra.mxu0 %v1496_v60  ;;  %v1898_v60 = vld [vmem:[%s3257_s3 + $0x4c8] ss:$0 sm:$0xff] }
 0x655   :  { %v1321_v63 = vpop.f32.mrf.mxu1 }
 0x656   :  { %v1322_v0 = vadd.f32 %v1321_v63, %v1177_v61  ;;  %v1511_v61 = vld [vmem:[%s3257_s3 + $0x3e8] sm:$0xff]  ;;  %v1510_v63 = vld [vmem:[%s3257_s3 + $0x3e0] sm:$0xff] }
 0x657   :  { %v2142_v1 = vpop.f32.mrf.mxu1  ;;  %2059 = vmatprep.subr.mxu0 %v1511_v61 }
 0x658   :  { %v1342_v3 = vrot.slane %v1322_v0, %v2686_v47  ;;  %v1494_v0 = vld [vmem:[%s3257_s3 + $0x360] sm:$0xff]  ;;  %2060 = vmatpush3.msra.mxu0 %v1495_v62  ;;  %v1509_v1 = vld [vmem:[%s3257_s3 + $0x3d8] sm:$0xff] }
 0x659   :  { %2061 = vmatprep.subr.mxu0 %v1510_v63 }
 0x65a   :  { %v1343_v5 = vcombine.low %v1335_v2, %v1342_v3  ;;  %v1493_v2 = vld [vmem:[%s3257_s3 + $0x358] sm:$0xff]  ;;  %2062 = vmatpush3.msra.mxu0 %v1494_v0 }
 0x65b   :  { %2063 = vmatprep.subr.mxu0 %v1509_v1 }
 0x65c   :  { %v3053_v32 = vadd.f32 %v1343_v5, %v2948_v11  ;;  %2064 = vmatpush3.msra.mxu0 %v1493_v2 }
 0x65e   :  { %v1347_v6 = vcombine.high %v3053_v32, %v3053_v32  ;;  %v1354_v7 = vrot.slane %v3053_v32, %v2686_v47  ;;  %v1374_v8 = vmul.f32 %v3053_v32, %v3053_v32 }
 0x660   :  { %v1361_v9 = vrot.slane %v1347_v6, %v2686_v47  ;;  %v1362_v10 = vcombine.high %v1354_v7, %v1354_v7  ;;  %v1376_v12 = vcombine.high %v1374_v8, %v1374_v8  ;;  %v1383_v13 = vrot.slane %v1374_v8, %v2686_v47 }
 0x661   :  { %v1366_v14 = vsel %vm807_vm5, %v1354_v7, 0.0 }
 0x662   :  { %v1367_v11 = vsel %vm807_vm5, %v1362_v10, 0.0  ;;  %v1391_v41 = vcombine.high %v1383_v13, %v1383_v13  ;;  %v1369_v16 = vsel %vm372_vm2, %v1361_v9, 0.0  ;;  %v1390_v17 = vrot.slane %v1376_v12, %v2686_v47  ;;  %v1892_v12 = vld [vmem:[%s3256_s2 + $0x540] ss:$8 sm:$0x7] }
 0x663   :  { %v1368_v15 = vadd.f32 %v1367_v11, %v1366_v14  ;;  %v1395_v19 = vsel %vm807_vm5, %v1383_v13, 0.0  ;;  %v1893_v13 = vld [vmem:[%s3256_s2 + $0x558] ss:$8 sm:$0x7]  ;;  %v1433_v14 = vrot.slane %v1892_v12, %v2522_v33  ;;  %v1437_v11 = vrot.slane %v1892_v12, %v2528_v35 }
 0x664   :  { %v1396_v20 = vsel %vm807_vm5, %v1391_v41, 0.0  ;;  %v1398_v23 = vsel %vm372_vm2, %v1390_v17, 0.0  ;;  %v1470_v41 = vrot.slane %v1893_v13, %v2528_v35 }
 0x665   :  { %v1370_v18 = vadd.f32 %v1369_v16, %v1368_v15  ;;  %v1397_v21 = vadd.f32 %v1396_v20, %v1395_v19  ;;  %v1466_v15 = vrot.slane %v1893_v13, %v2522_v33  ;;  %v1441_v16 = vrot.slane %v1892_v12, %v2784_v22 }
 0x666   :  { %v1442_v17 = vcombine.low %v1433_v14, %v1437_v11 }
 0x667   :  { %1371 = vadd.xlane.f32.xlu1 %v1370_v18  ;;  %v1399_v24 = vadd.f32 %v1398_v23, %v1397_v21  ;;  %v1474_v18 = vrot.slane %v1893_v13, %v2784_v22  ;;  %v1475_v19 = vcombine.low %v1466_v15, %v1470_v41  ;;  %v1456_v23 = vrot.slane %v1441_v16, %v2686_v47 }
 0x668   :  { %v1449_v21 = vrot.slane %v1442_v17, %v2686_v47 }
 0x669   :  { %v1489_v25 = vrot.slane %v1474_v18, %v2686_v47 }
 0x66a   :  { %v1457_v27 = vcombine.low %v1449_v21, %v1456_v23 }
 0x66b   :  { %1400 = vadd.xlane.f32.xlu1 %v1399_v24  ;;  %v1482_v24 = vrot.slane %v1475_v19, %v2686_v47 }
 0x66d   :  { %v1490_v29 = vcombine.low %v1482_v24, %v1489_v25 }
 0x6f0   :  { %v1372_v3 = vpop.xlane.xlu1 %1371 }
 0x6f1   :  { %v1373_v5 = vmul.f32 0.0034722222, %v1372_v3 }
 0x6f3   :  { %v1403_v7 = vmul.f32 %v1373_v5, %v1373_v5  ;;  %v1412_v20 = vrot.slane %v1373_v5, %v2937_v58 }
 0x6f4   :  { %v1401_v6 = vpop.xlane.xlu1 %1400 }
 0x6f5   :  { %v1402_v8 = vmul.f32 0.0034722222, %v1401_v6  ;;  %v1414_v33 = vsub.f32 %v3053_v32, %v1412_v20  ;;  %v1698_v32 = vld [vmem:[%s3257_s3 + $0x490] sm:$0xff] }
 0x6f7   :  { %v1404_v9 = vsub.f32 %v1402_v8, %v1403_v7 }
 0x6f9   :  { %v1415_v10 = vadd.f32 1e-05, %v1404_v9 }
 0x6fb   :  { %2184 = vrsqrt.f32 %v1415_v10 }
 0x708   :  { %v2185_v26 = vpop.eup %2184 }
 0x709   :  { %v1424_v35 = vrot.slane %v2185_v26, %v2937_v58  ;;  %v1699_v58 = vld [vmem:[%s3257_s3 + $0x498] sm:$0xff] }
 0x70b   :  { %v1426_v28 = vmul.f32 %v1424_v35, %v1414_v33 }
 0x70d   :  { %v1459_v22 = vmul.f32 %v1457_v27, %v1426_v28 }
 0x70f   :  { %v1492_v30 = vadd.f32 %v1490_v29, %v1459_v22 }
 0x711   :  { %v1535_v31 = vcombine.high %v1492_v30, %v1492_v30  ;;  %v1542_v34 = vrot.slane %v1492_v30, %v2686_v47 }
 0x713   :  { %v1550_v36 = vcombine.high %v1542_v34, %v1542_v34  ;;  %v1549_v37 = vrot.slane %v1535_v31, %v2686_v47  ;;  %v1697_v47 = vld [vmem:[%s3257_s3 + $0x488] sm:$0xff] }
 0x715   :  { %1619 = vmatprep.mubr.f32.mxu0 %v1550_v36  ;;  %2152 = vmatmul.mubr.msk.f32.vlgmr.msra.gmra.mxu1 %vm435_vm3, %v1549_v37 }
 0x716   :  { %1620 = vmatmul.mubr.f32.vlgmr.msra.gmra.mxu0 %v1542_v34  ;;  %2162 = vmatprep.mubr.msk.f32.mxu1 %vm2209_vm1, %v2208_v4 }
 0x717   :  { %2155 = vmatpush3.msra.mxu1 %v1699_v58 }
 0x718   :  { %2156 = vmatprep.subr.mxu1 %v2208_v4 }
 0x719   :  { %2157 = vmatpush3.msra.mxu1 %v1698_v32 }
 0x71a   :  { %2158 = vmatprep.subr.mxu1 %v2208_v4 }
 0x71b   :  { %2159 = vmatpush3.msra.mxu1 %v1697_v47 }
 0x71c   :  { %2160 = vmatprep.subr.mxu1 %v2208_v4 }
 0x71d   :  { %2161 = vmatpush3.msra.mxu1 %v1696_v38 }
 0x71e   :  { %2165 = vmatprep.subr.mxu1 %v2208_v4 }
 0x7d5   :  { %v1691_v39 = vpop.f32.mrf.mxu1 }
 0x7d6   :  { %v2065_v40 = vpop.f32.mrf.mxu0 }
 0x7d7   :  { %v2153_v42 = vpop.f32.mrf.mxu1 }
 0x7d8   :  { %v2066_v44 = vpop.f32.mrf.mxu0 }
 0x7d9   :  { %v2067_v45 = vadd.f32 %v2066_v44, %v2065_v40 }
 0x7db   :  { %v1622_v46 = vadd.f32 %v2067_v45, %v1894_v43 }
 0x7dd   :  { %v1692_v49 = vadd.f32 %v1691_v39, %v1622_v46 }
 0x7df   :  { %v1695_v50 = vmax.f32 %v1692_v49, 0.0 }
 0x7e1   :  { %2163 = vmatmul.mubr.msk.f32.vlgmr.msra.gmra.mxu1 %vm435_vm3, %v1695_v50 }
 0x7e2   :  { %2166 = vmatpush3.msra.mxu1 %v1782_v51  ;;  %2173 = vmatprep.mubr.msk.f32.mxu1 %vm2209_vm1, %v2208_v4 }
 0x7e3   :  { %2167 = vmatprep.subr.mxu1 %v2208_v4 }
 0x7e4   :  { %2168 = vmatpush3.msra.mxu1 %v1781_v48 }
 0x7e5   :  { %2169 = vmatprep.subr.mxu1 %v2208_v4 }
 0x7e6   :  { %2170 = vmatpush3.msra.mxu1 %v1780_v52 }
 0x7e7   :  { %2171 = vmatprep.subr.mxu1 %v2208_v4 }
 0x7e8   :  { %2172 = vmatpush3.msra.mxu1 %v1779_v53 }
 0x8a1   :  { %v1774_v55 = vpop.f32.mrf.mxu1 }
 0x8a2   :  { %v1775_v56 = vadd.f32 %v1896_v54, %v1774_v55 }
 0x8a3   :  { %v2164_v57 = vpop.f32.mrf.mxu1 }
 0x8a4   :  { %v1778_v59 = vmax.f32 %v1775_v56, 0.0 }
 0x8a6   :  { %2174 = vmatmul.mubr.msk.f32.vlgmr.msra.gmra.mxu1 %vm435_vm3, %v1778_v59 }
 0x966   :  { %v1857_v61 = vpop.f32.mrf.mxu1 }
 0x967   :  { %v1858_v62 = vadd.f32 %v1898_v60, %v1857_v61 }
 0x968   :  { %v2175_v4 = vpop.f32.mrf.mxu1 }
 0x969   :  { %1861 = vst.msk [vmem:[#allocation3] sm:$0x3] %vm372_vm2, %v1858_v62 }
 0x96a   :  { %2197 = shalt.err (!%p2194_p4)
}
 0x96b   :  { %1871 = dma.vmem_to_hbm [thread:$0]  %s1869_s24, 32, %s3258_s4, [#allocation4]  }
 0x96c   :  { %2206 = dma.done.wait [#allocation4], 32  }
 0x96d   :  { %2207 = vsyncadd [#allocation4], 4294967264 }
 0x96e   :  { %1875 = vsyncpa [#allocation4], 1 }

</bundles_post_ra>
